<compile_context>
chip_gen: v5e
topology: v5e:2x2
jax: 0.10.0
libtpu: 0.0.40
codegen_flags: <defaults>
</compile_context>

<pallas_src>
import jax
import jax.numpy as jnp
from jax.experimental import pallas as pl
from jax.experimental.pallas import tpu as pltpu

_SUBLANE = 16              # bf16 native sublane tile height (2 rows packed per sublane)
_MiB = 1024 * 1024


def _round_up(x, m):
    return (x + m - 1) // m * m


def _device_kind():
    try:
        return jax.devices()[0].device_kind.lower()
    except Exception:
        return ""


def _budget_and_lane_align(kind):
    """(VMEM budget bytes, feature-dim alignment) per TPU generation."""
    if "v7" in kind:
        return 48 * _MiB, 256      # 64 MiB/TC physical; headroom for compiler scratch
    if "v6" in kind:
        return 96 * _MiB, 256      # 128 MiB physical, 2x256x256 MXU
    if "v5" in kind:
        return 96 * _MiB, 128      # 128 MiB physical, 4x128x128 MXU -> 128 already full
    return 32 * _MiB, 128          # unknown chip: conservative


def mlp_kernel(x_ref, w1_ref, b1_ref, w2_ref, b2_ref, w3_ref, b3_ref, o_ref):
    """Whole forward pass for one batch tile, fused in VMEM.

    x/W are bf16 (MXU-native); accumulation, biases and output are f32.
    """
    h1 = jnp.dot(x_ref[...], w1_ref[...], preferred_element_type=jnp.float32) + b1_ref[...]
    h1 = jnp.maximum(h1, 0.0).astype(jnp.bfloat16)

    h2 = jnp.dot(h1, w2_ref[...], preferred_element_type=jnp.float32) + b2_ref[...]
    h2 = jnp.maximum(h2, 0.0).astype(jnp.bfloat16)

    out = jnp.dot(h2, w3_ref[...], preferred_element_type=jnp.float32) + b3_ref[...]
    o_ref[...] = out.astype(o_ref.dtype)


def mlp_forward(x, params, *, tile_b=512):
    """Run the fused 3-layer MLP.

    params = (w1, b1, w2, b2, w3, b3) with w_i of shape [in, out] and b_i of shape [1, out].
    x: [B, input_dim] float32 (or bf16). Returns [B, output_dim] float32.
    """
    w1, b1, w2, b2, w3, b3 = params
    B, in_dim = x.shape
    hid = w1.shape[1]
    out_dim = w3.shape[1]

    kind = _device_kind()
    budget, lane_align = _budget_and_lane_align(kind)
    two_cores = "v7" in kind

    # Lane-dense padded feature dims: 128 floor for tiny dims, generation-specific
    # alignment (256 on v6e/v7x) for larger ones.
    def pad_dim(d):
        return 128 if d <= 128 else _round_up(d, lane_align)

    in_p, hid_p, out_p = pad_dim(in_dim), pad_dim(hid), pad_dim(out_dim)

    BF16, F32 = 2, 4
    # Resident weights/biases (single copy: constant index_map + Buffered(1)).
    weight_bytes = ((in_p * hid_p + hid_p * hid_p + hid_p * out_p) * BF16
                    + (2 * hid_p + out_p) * F32)
    # Per batch-row VMEM: double-buffered x/out tiles + f32/bf16 activation temporaries.
    per_row_bytes = (2 * in_p * BF16 + 2 * out_p * F32
                     + hid_p * (F32 + BF16) * 2 + out_p * F32)

    budget_eff = int(budget * 0.85)   # headroom: estimate omits Mosaic internal scratch
    assert weight_bytes < budget_eff, (
        "resident weights exceed the VMEM budget for this width")
    # TODO(synk): add a K/N-tiled path (reduction axis last, pl.when-guarded f32
    # accumulator, single-buffered weight blocks) for hidden widths whose weights
    # do not fit VMEM (~3-4k on v7x, ~5-6k on v5e/v6e).

    max_tile = ((budget_eff - weight_bytes) // per_row_bytes) // _SUBLANE * _SUBLANE
    assert max_tile >= _SUBLANE, "not even a minimal batch tile fits the VMEM budget"

    tile_b = max(_SUBLANE, min(tile_b, max_tile, _round_up(B, _SUBLANE)))
    if two_cores and B >= 2 * _SUBLANE:
        # v7x: keep at least 2 batch tiles so the "parallel" grid axis feeds both TCs.
        tile_b = min(tile_b, _round_up(-(-B // 2), _SUBLANE))
    assert tile_b % _SUBLANE == 0

    B_p = _round_up(B, tile_b)
    grid = (B_p // tile_b,)

    # Inputs: cast to bf16; only materialize a padded copy if padding is actually needed.
    x_bf16 = x.astype(jnp.bfloat16)
    if B_p == B and in_p == in_dim:
        x_pad = x_bf16
    else:
        x_pad = jnp.zeros((B_p, in_p), jnp.bfloat16).at[:B, :in_dim].set(x_bf16)

    def pad2(a, r, c, dtype):
        a = a.astype(dtype)
        if a.shape == (r, c):
            return a
        return jnp.zeros((r, c), dtype).at[: a.shape[0], : a.shape[1]].set(a)

    w1p = pad2(w1, in_p, hid_p, jnp.bfloat16)
    w2p = pad2(w2, hid_p, hid_p, jnp.bfloat16)
    w3p = pad2(w3, hid_p, out_p, jnp.bfloat16)
    b1p = pad2(b1, 1, hid_p, jnp.float32)
    b2p = pad2(b2, 1, hid_p, jnp.float32)
    b3p = pad2(b3, 1, out_p, jnp.float32)

    x_spec = pl.BlockSpec((tile_b, in_p), lambda i: (i, 0))
    o_spec = pl.BlockSpec((tile_b, out_p), lambda i: (i, 0))

    def build(weight_mode):
        def rep(shape):
            if weight_mode is None:
                return pl.BlockSpec(shape, lambda i: (0, 0))
            return pl.BlockSpec(shape, lambda i: (0, 0), pipeline_mode=weight_mode)

        return pl.pallas_call(
            mlp_kernel,
            out_shape=jax.ShapeDtypeStruct((B_p, out_p), jnp.float32),
            grid_spec=pltpu.PrefetchScalarGridSpec(
                num_scalar_prefetch=0,
                grid=grid,
                in_specs=[
                    x_spec,
                    rep((in_p, hid_p)),
                    rep((1, hid_p)),
                    rep((hid_p, hid_p)),
                    rep((1, hid_p)),
                    rep((hid_p, out_p)),
                    rep((1, out_p)),
                ],
                out_specs=o_spec,
            ),
            compiler_params=pltpu.CompilerParams(
                dimension_semantics=("parallel",),
                vmem_limit_bytes=budget,
            ),
        )

    args = (x_pad, w1p, b1p, w2p, b2p, w3p, b3p)
    buffered = getattr(pl, "Buffered", None)
    if buffered is not None:
        try:
            # Single-buffer the replicated weights/biases: constant index_map means they
            # are fetched once, so the second pipeline buffer is pure VMEM waste.
            out_padded = build(buffered(1))(*args)
        except Exception:
            # pipeline_mode unsupported on this JAX build's top-level specs: fall back to
            # default double-buffering (still only fetched once, just 2x weight residency).
            out_padded = build(None)(*args)
    else:
        out_padded = build(None)(*args)

    if B_p == B and out_p == out_dim:
        return out_padded
    return out_padded[:B, :out_dim]


def init_params(key, input_dim, hidden_dim, output_dim, dtype=jnp.float32):
    """Deterministic init mimicking nn.Linear's U(-1/sqrt(fan_in), 1/sqrt(fan_in)).
    Weights are stored transposed ([in, out]) relative to PyTorch."""
    ks = jax.random.split(key, 6)

    def lin(kw, kb, fan_in, fan_out):
        bound = 1.0 / jnp.sqrt(fan_in)
        w = jax.random.uniform(kw, (fan_in, fan_out), dtype, -bound, bound)
        b = jax.random.uniform(kb, (1, fan_out), dtype, -bound, bound)
        return w, b

    w1, b1 = lin(ks[0], ks[1], input_dim, hidden_dim)
    w2, b2 = lin(ks[2], ks[3], hidden_dim, hidden_dim)
    w3, b3 = lin(ks[4], ks[5], hidden_dim, output_dim)
    return (w1, b1, w2, b2, w3, b3)


def mlp_reference(x, params):
    """Reference mirroring the kernel's bf16-operand / f32-accumulate numerics."""
    w1, b1, w2, b2, w3, b3 = params

    def q(a):  # quantize operand to bf16, compute in f32
        return a.astype(jnp.bfloat16).astype(jnp.float32)

    h = jnp.maximum(q(x) @ q(w1) + b1.astype(jnp.float32), 0.0)
    h = jnp.maximum(q(h) @ q(w2) + b2.astype(jnp.float32), 0.0)
    return q(h) @ q(w3) + b3.astype(jnp.float32)


if __name__ == "__main__":
    key = jax.random.PRNGKey(0)
    k_x, k_p = jax.random.split(key)

    batch, input_dim, hidden_dim, output_dim = 512, 16, 32, 8
    x = jax.random.normal(k_x, (batch, input_dim), jnp.float32)
    params = init_params(k_p, input_dim, hidden_dim, output_dim)

    out = mlp_forward(x, params)           # v5e/v6e: 1 big tile; v7x: 2 tiles (one per TC)
    out = jax.block_until_ready(out)

    ref = mlp_reference(x, params)
    assert out.shape == (batch, output_dim)
    max_err = float(jnp.max(jnp.abs(out - ref)))
    assert jnp.allclose(out, ref, atol=1e-2, rtol=1e-2), f"mismatch vs reference (max err {max_err})"

    print("KERNEL_OK")
</pallas_src>

<mosaic_0001>
module attributes {stable_mosaic.version = 11 : i64} {
  func.func @mlp_kernel(%arg0: i32, %arg1: memref<512x128xbf16, #tpu.memory_space<vmem>>, %arg2: memref<128x128xbf16, #tpu.memory_space<vmem>>, %arg3: memref<1x128xf32, #tpu.memory_space<vmem>>, %arg4: memref<128x128xbf16, #tpu.memory_space<vmem>>, %arg5: memref<1x128xf32, #tpu.memory_space<vmem>>, %arg6: memref<128x128xbf16, #tpu.memory_space<vmem>>, %arg7: memref<1x128xf32, #tpu.memory_space<vmem>>, %arg8: memref<512x128xf32, #tpu.memory_space<vmem>>) attributes {dimension_semantics = [#tpu.dimension_semantics<parallel>], iteration_bounds = array<i64: 1>, scalar_prefetch = 0 : i64, scratch_operands = 0 : i64, tpu.core_type = #tpu.core_type<tc>, window_params = [{transform_indices = @transform_0, window_bounds = array<i64: 512, 128>}, {pipeline_mode = #tpu.pipeline_mode<synchronous>, transform_indices = @transform_1, window_bounds = array<i64: 128, 128>}, {pipeline_mode = #tpu.pipeline_mode<synchronous>, transform_indices = @transform_2, window_bounds = array<i64: 1, 128>}, {pipeline_mode = #tpu.pipeline_mode<synchronous>, transform_indices = @transform_3, window_bounds = array<i64: 128, 128>}, {pipeline_mode = #tpu.pipeline_mode<synchronous>, transform_indices = @transform_4, window_bounds = array<i64: 1, 128>}, {pipeline_mode = #tpu.pipeline_mode<synchronous>, transform_indices = @transform_5, window_bounds = array<i64: 128, 128>}, {pipeline_mode = #tpu.pipeline_mode<synchronous>, transform_indices = @transform_6, window_bounds = array<i64: 1, 128>}, {transform_indices = @transform_7, window_bounds = array<i64: 512, 128>}]} {
    %c0 = arith.constant 0 : index
    %c0_0 = arith.constant 0 : index
    %0 = vector.load %arg1[%c0, %c0_0] : memref<512x128xbf16, #tpu.memory_space<vmem>>, vector<512x128xbf16>
    %c0_1 = arith.constant 0 : index
    %c0_2 = arith.constant 0 : index
    %1 = vector.load %arg2[%c0_1, %c0_2] : memref<128x128xbf16, #tpu.memory_space<vmem>>, vector<128x128xbf16>
    %cst = arith.constant dense<0.000000e+00> : vector<512x128xf32>
    %2 = tpu.matmul %0, %1, %cst {dimension_numbers = #tpu.dot_dimension_numbers<[1], [0], [0], [1], [0, 0, 1, 1], [], []>} : vector<512x128xbf16>, vector<128x128xbf16>, vector<512x128xf32> -> vector<512x128xf32>
    %c0_3 = arith.constant 0 : index
    %c0_4 = arith.constant 0 : index
    %3 = vector.load %arg3[%c0_3, %c0_4] : memref<1x128xf32, #tpu.memory_space<vmem>>, vector<1x128xf32>
    %4 = vector.broadcast %3 : vector<1x128xf32> to vector<512x128xf32>
    %5 = arith.addf %2, %4 : vector<512x128xf32>
    %cst_5 = arith.constant 0.000000e+00 : f32
    %6 = vector.broadcast %cst_5 : f32 to vector<512x128xf32>
    %7 = arith.maximumf %5, %6 : vector<512x128xf32>
    %8 = arith.truncf %7 : vector<512x128xf32> to vector<512x128xbf16>
    %c0_6 = arith.constant 0 : index
    %c0_7 = arith.constant 0 : index
    %9 = vector.load %arg4[%c0_6, %c0_7] : memref<128x128xbf16, #tpu.memory_space<vmem>>, vector<128x128xbf16>
    %cst_8 = arith.constant dense<0.000000e+00> : vector<512x128xf32>
    %10 = tpu.matmul %8, %9, %cst_8 {dimension_numbers = #tpu.dot_dimension_numbers<[1], [0], [0], [1], [0, 0, 1, 1], [], []>} : vector<512x128xbf16>, vector<128x128xbf16>, vector<512x128xf32> -> vector<512x128xf32>
    %c0_9 = arith.constant 0 : index
    %c0_10 = arith.constant 0 : index
    %11 = vector.load %arg5[%c0_9, %c0_10] : memref<1x128xf32, #tpu.memory_space<vmem>>, vector<1x128xf32>
    %12 = vector.broadcast %11 : vector<1x128xf32> to vector<512x128xf32>
    %13 = arith.addf %10, %12 : vector<512x128xf32>
    %cst_11 = arith.constant 0.000000e+00 : f32
    %14 = vector.broadcast %cst_11 : f32 to vector<512x128xf32>
    %15 = arith.maximumf %13, %14 : vector<512x128xf32>
    %16 = arith.truncf %15 : vector<512x128xf32> to vector<512x128xbf16>
    %c0_12 = arith.constant 0 : index
    %c0_13 = arith.constant 0 : index
    %17 = vector.load %arg6[%c0_12, %c0_13] : memref<128x128xbf16, #tpu.memory_space<vmem>>, vector<128x128xbf16>
    %cst_14 = arith.constant dense<0.000000e+00> : vector<512x128xf32>
    %18 = tpu.matmul %16, %17, %cst_14 {dimension_numbers = #tpu.dot_dimension_numbers<[1], [0], [0], [1], [0, 0, 1, 1], [], []>} : vector<512x128xbf16>, vector<128x128xbf16>, vector<512x128xf32> -> vector<512x128xf32>
    %c0_15 = arith.constant 0 : index
    %c0_16 = arith.constant 0 : index
    %19 = vector.load %arg7[%c0_15, %c0_16] : memref<1x128xf32, #tpu.memory_space<vmem>>, vector<1x128xf32>
    %20 = vector.broadcast %19 : vector<1x128xf32> to vector<512x128xf32>
    %21 = arith.addf %18, %20 : vector<512x128xf32>
    %c0_17 = arith.constant 0 : index
    %c0_18 = arith.constant 0 : index
    %22 = vector.load %arg8[%c0_17, %c0_18] : memref<512x128xf32, #tpu.memory_space<vmem>>, vector<512x128xf32>
    tpu.vector_store %arg8[%c0_17, %c0_18], %21 {strides = array<i32>} : memref<512x128xf32, #tpu.memory_space<vmem>>, vector<512x128xf32>,
    return
  }
  func.func @transform_0(%arg0: i32) -> (i32, i32) {
    %c0_i32 = arith.constant 0 : i32
    %c0_i32_0 = arith.constant 0 : i32
    return %arg0, %c0_i32 : i32, i32
  }
  func.func @transform_1(%arg0: i32) -> (i32, i32) {
    %c0_i32 = arith.constant 0 : i32
    %c0_i32_0 = arith.constant 0 : i32
    %c0_i32_1 = arith.constant 0 : i32
    return %c0_i32, %c0_i32_0 : i32, i32
  }
  func.func @transform_2(%arg0: i32) -> (i32, i32) {
    %c0_i32 = arith.constant 0 : i32
    %c0_i32_0 = arith.constant 0 : i32
    %c0_i32_1 = arith.constant 0 : i32
    return %c0_i32, %c0_i32_0 : i32, i32
  }
  func.func @transform_3(%arg0: i32) -> (i32, i32) {
    %c0_i32 = arith.constant 0 : i32
    %c0_i32_0 = arith.constant 0 : i32
    %c0_i32_1 = arith.constant 0 : i32
    return %c0_i32, %c0_i32_0 : i32, i32
  }
  func.func @transform_4(%arg0: i32) -> (i32, i32) {
    %c0_i32 = arith.constant 0 : i32
    %c0_i32_0 = arith.constant 0 : i32
    %c0_i32_1 = arith.constant 0 : i32
    return %c0_i32, %c0_i32_0 : i32, i32
  }
  func.func @transform_5(%arg0: i32) -> (i32, i32) {
    %c0_i32 = arith.constant 0 : i32
    %c0_i32_0 = arith.constant 0 : i32
    %c0_i32_1 = arith.constant 0 : i32
    return %c0_i32, %c0_i32_0 : i32, i32
  }
  func.func @transform_6(%arg0: i32) -> (i32, i32) {
    %c0_i32 = arith.constant 0 : i32
    %c0_i32_0 = arith.constant 0 : i32
    %c0_i32_1 = arith.constant 0 : i32
    return %c0_i32, %c0_i32_0 : i32, i32
  }
  func.func @transform_7(%arg0: i32) -> (i32, i32) {
    %c0_i32 = arith.constant 0 : i32
    %c0_i32_0 = arith.constant 0 : i32
    return %arg0, %c0_i32 : i32, i32
  }
}

module attributes {stable_mosaic.version = 11 : i64} {
  func.func @mlp_kernel(%arg0: i32, %arg1: memref<512x128xbf16, #tpu.memory_space<vmem>>, %arg2: memref<128x128xbf16, #tpu.memory_space<vmem>>, %arg3: memref<1x128xf32, #tpu.memory_space<vmem>>, %arg4: memref<128x128xbf16, #tpu.memory_space<vmem>>, %arg5: memref<1x128xf32, #tpu.memory_space<vmem>>, %arg6: memref<128x128xbf16, #tpu.memory_space<vmem>>, %arg7: memref<1x128xf32, #tpu.memory_space<vmem>>, %arg8: memref<512x128xf32, #tpu.memory_space<vmem>>) attributes {dimension_semantics = [#tpu.dimension_semantics<parallel>], iteration_bounds = array<i64: 1>, scalar_prefetch = 0 : i64, scratch_operands = 0 : i64, tpu.core_type = #tpu.core_type<tc>, window_params = [{transform_indices = @transform_0, window_bounds = array<i64: 512, 128>}, {pipeline_mode = #tpu.pipeline_mode<synchronous>, transform_indices = @transform_1, window_bounds = array<i64: 128, 128>}, {pipeline_mode = #tpu.pipeline_mode<synchronous>, transform_indices = @transform_2, window_bounds = array<i64: 1, 128>}, {pipeline_mode = #tpu.pipeline_mode<synchronous>, transform_indices = @transform_3, window_bounds = array<i64: 128, 128>}, {pipeline_mode = #tpu.pipeline_mode<synchronous>, transform_indices = @transform_4, window_bounds = array<i64: 1, 128>}, {pipeline_mode = #tpu.pipeline_mode<synchronous>, transform_indices = @transform_5, window_bounds = array<i64: 128, 128>}, {pipeline_mode = #tpu.pipeline_mode<synchronous>, transform_indices = @transform_6, window_bounds = array<i64: 1, 128>}, {transform_indices = @transform_7, window_bounds = array<i64: 512, 128>}]} {
    %c0 = arith.constant 0 : index
    %c0_0 = arith.constant 0 : index
    %0 = vector.load %arg1[%c0, %c0_0] : memref<512x128xbf16, #tpu.memory_space<vmem>>, vector<512x128xbf16>
    %c0_1 = arith.constant 0 : index
    %c0_2 = arith.constant 0 : index
    %1 = vector.load %arg2[%c0_1, %c0_2] : memref<128x128xbf16, #tpu.memory_space<vmem>>, vector<128x128xbf16>
    %cst = arith.constant dense<0.000000e+00> : vector<512x128xf32>
    %2 = tpu.matmul %0, %1, %cst {dimension_numbers = #tpu.dot_dimension_numbers<[1], [0], [0], [1], [0, 0, 1, 1], [], []>} : vector<512x128xbf16>, vector<128x128xbf16>, vector<512x128xf32> -> vector<512x128xf32>
    %c0_3 = arith.constant 0 : index
    %c0_4 = arith.constant 0 : index
    %3 = vector.load %arg3[%c0_3, %c0_4] : memref<1x128xf32, #tpu.memory_space<vmem>>, vector<1x128xf32>
    %4 = vector.broadcast %3 : vector<1x128xf32> to vector<512x128xf32>
    %5 = arith.addf %2, %4 : vector<512x128xf32>
    %cst_5 = arith.constant 0.000000e+00 : f32
    %6 = vector.broadcast %cst_5 : f32 to vector<512x128xf32>
    %7 = arith.maximumf %5, %6 : vector<512x128xf32>
    %8 = arith.truncf %7 : vector<512x128xf32> to vector<512x128xbf16>
    %c0_6 = arith.constant 0 : index
    %c0_7 = arith.constant 0 : index
    %9 = vector.load %arg4[%c0_6, %c0_7] : memref<128x128xbf16, #tpu.memory_space<vmem>>, vector<128x128xbf16>
    %cst_8 = arith.constant dense<0.000000e+00> : vector<512x128xf32>
    %10 = tpu.matmul %8, %9, %cst_8 {dimension_numbers = #tpu.dot_dimension_numbers<[1], [0], [0], [1], [0, 0, 1, 1], [], []>} : vector<512x128xbf16>, vector<128x128xbf16>, vector<512x128xf32> -> vector<512x128xf32>
    %c0_9 = arith.constant 0 : index
    %c0_10 = arith.constant 0 : index
    %11 = vector.load %arg5[%c0_9, %c0_10] : memref<1x128xf32, #tpu.memory_space<vmem>>, vector<1x128xf32>
    %12 = vector.broadcast %11 : vector<1x128xf32> to vector<512x128xf32>
    %13 = arith.addf %10, %12 : vector<512x128xf32>
    %cst_11 = arith.constant 0.000000e+00 : f32
    %14 = vector.broadcast %cst_11 : f32 to vector<512x128xf32>
    %15 = arith.maximumf %13, %14 : vector<512x128xf32>
    %16 = arith.truncf %15 : vector<512x128xf32> to vector<512x128xbf16>
    %c0_12 = arith.constant 0 : index
    %c0_13 = arith.constant 0 : index
    %17 = vector.load %arg6[%c0_12, %c0_13] : memref<128x128xbf16, #tpu.memory_space<vmem>>, vector<128x128xbf16>
    %cst_14 = arith.constant dense<0.000000e+00> : vector<512x128xf32>
    %18 = tpu.matmul %16, %17, %cst_14 {dimension_numbers = #tpu.dot_dimension_numbers<[1], [0], [0], [1], [0, 0, 1, 1], [], []>} : vector<512x128xbf16>, vector<128x128xbf16>, vector<512x128xf32> -> vector<512x128xf32>
    %c0_15 = arith.constant 0 : index
    %c0_16 = arith.constant 0 : index
    %19 = vector.load %arg7[%c0_15, %c0_16] : memref<1x128xf32, #tpu.memory_space<vmem>>, vector<1x128xf32>
    %20 = vector.broadcast %19 : vector<1x128xf32> to vector<512x128xf32>
    %21 = arith.addf %18, %20 : vector<512x128xf32>
    %c0_17 = arith.constant 0 : index
    %c0_18 = arith.constant 0 : index
    %22 = vector.load %arg8[%c0_17, %c0_18] : memref<512x128xf32, #tpu.memory_space<vmem>>, vector<512x128xf32>
    tpu.vector_store %arg8[%c0_17, %c0_18], %21 {strides = array<i32>} : memref<512x128xf32, #tpu.memory_space<vmem>>, vector<512x128xf32>,
    return
  }
  func.func @transform_0(%arg0: i32) -> (i32, i32) {
    %c0_i32 = arith.constant 0 : i32
    %c0_i32_0 = arith.constant 0 : i32
    return %arg0, %c0_i32 : i32, i32
  }
  func.func @transform_1(%arg0: i32) -> (i32, i32) {
    %c0_i32 = arith.constant 0 : i32
    %c0_i32_0 = arith.constant 0 : i32
    %c0_i32_1 = arith.constant 0 : i32
    return %c0_i32, %c0_i32_0 : i32, i32
  }
  func.func @transform_2(%arg0: i32) -> (i32, i32) {
    %c0_i32 = arith.constant 0 : i32
    %c0_i32_0 = arith.constant 0 : i32
    %c0_i32_1 = arith.constant 0 : i32
    return %c0_i32, %c0_i32_0 : i32, i32
  }
  func.func @transform_3(%arg0: i32) -> (i32, i32) {
    %c0_i32 = arith.constant 0 : i32
    %c0_i32_0 = arith.constant 0 : i32
    %c0_i32_1 = arith.constant 0 : i32
    return %c0_i32, %c0_i32_0 : i32, i32
  }
  func.func @transform_4(%arg0: i32) -> (i32, i32) {
    %c0_i32 = arith.constant 0 : i32
    %c0_i32_0 = arith.constant 0 : i32
    %c0_i32_1 = arith.constant 0 : i32
    return %c0_i32, %c0_i32_0 : i32, i32
  }
  func.func @transform_5(%arg0: i32) -> (i32, i32) {
    %c0_i32 = arith.constant 0 : i32
    %c0_i32_0 = arith.constant 0 : i32
    %c0_i32_1 = arith.constant 0 : i32
    return %c0_i32, %c0_i32_0 : i32, i32
  }
  func.func @transform_6(%arg0: i32) -> (i32, i32) {
    %c0_i32 = arith.constant 0 : i32
    %c0_i32_0 = arith.constant 0 : i32
    %c0_i32_1 = arith.constant 0 : i32
    return %c0_i32, %c0_i32_0 : i32, i32
  }
  func.func @transform_7(%arg0: i32) -> (i32, i32) {
    %c0_i32 = arith.constant 0 : i32
    %c0_i32_0 = arith.constant 0 : i32
    return %arg0, %c0_i32 : i32, i32
  }
}

</mosaic_0001>

<bundles_post_ra>
// kernel: tpu_custom_call.1
= control target key start
LH: loop header
LB: loop body
LE: loop exit
PB: predicated region body
PF: predicated region fallthrough
CT: control target
= control target key end

     0   :  { %12 = vsyncpa [#allocation3], 0  ;;  %s2047_s0 = inlined_call_operand.hbm [shape: bf16[512,128], index: 0, kind: input, shape index: {}]   ;;  %s2048_s1 = inlined_call_operand.hbm [shape: bf16[128,128], index: 1, kind: input, shape index: {}]   ;;  %s2049_s2 = inlined_call_operand.vmem [shape: f32[1,128], index: 2, kind: input, shape index: {}]   ;;  %s2050_s3 = inlined_call_operand.hbm [shape: bf16[128,128], index: 3, kind: input, shape index: {}]   ;;  %s2051_s4 = inlined_call_operand.vmem [shape: f32[1,128], index: 4, kind: input, shape index: {}]   ;;  %s2052_s5 = inlined_call_operand.hbm [shape: bf16[128,128], index: 5, kind: input, shape index: {}]   ;;  %s2053_s6 = inlined_call_operand.vmem [shape: f32[1,128], index: 6, kind: input, shape index: {}]   ;;  %s2054_s7 = inlined_call_operand.hbm [shape: f32[512,128], index: 7, kind: output, shape index: {}]  }
   0x1   :  { %13 = vsyncpa [#allocation6], 0 }
   0x2   :  { %14 = vsyncpa [#allocation9], 0 }
   0x3   :  { %15 = vsyncpa [#allocation4], 0  ;;  %s33_s26 = sshll.u32 %s2048_s1, 4  ;;  %s1779_s27 = smov [#allocation5]   ;;  %s34_s26 = int_to_ptr.hbm [resolvable:$true] %s33_s26 }
   0x4   :  { %s35_s28 = sshll.u32 %s1779_s27, 4  ;;  %s20_s8 = sshll.u32 %s2047_s0, 4  ;;  %s36_s28 = int_to_ptr.vmem [resolvable:$true] %s35_s28  ;;  %s21_s8 = int_to_ptr.hbm [resolvable:$true] %s20_s8 }
   0x5   :  { %s1780_s9 = smov 64   ;;  %s1781_s10 = smov 4  }
   0x6   :  { %41 = dma.hbm_to_vmem [thread:$0]  %s34_s26, 1024, %s36_s28, [#allocation6], %s1780_s9, %s1780_s9, %s1781_s10  }
   0x7   :  { %s1782_s11 = smov [#allocation2]   ;;  %s48_s15 = sshll.u32 %s2050_s3, 4  ;;  %s49_s15 = int_to_ptr.hbm [resolvable:$true] %s48_s15 }
   0x8   :  { %s22_s12 = sshll.u32 %s1782_s11, 4  ;;  %s63_s17 = sshll.u32 %s2052_s5, 4  ;;  %s23_s12 = int_to_ptr.vmem [resolvable:$true] %s22_s12  ;;  %s64_s17 = int_to_ptr.hbm [resolvable:$true] %s63_s17 }
   0x9   :  { %28 = dma.hbm_to_vmem [thread:$0]  %s21_s8, 4096, %s23_s12, [#allocation3], %s1780_s9, %s1780_s9, %s1781_s10  }
   0xa   :  { %s1783_s18 = smov [#allocation7]   ;;  %s1784_s0 = smov [#allocation8]  }
   0xb   :  { %s50_s19 = sshll.u32 %s1783_s18, 4  ;;  %s65_s20 = sshll.u32 %s1784_s0, 4  ;;  %s51_s19 = int_to_ptr.vmem [resolvable:$true] %s50_s19  ;;  %s66_s20 = int_to_ptr.vmem [resolvable:$true] %s65_s20 }
   0xc   :  { %56 = dma.hbm_to_vmem [thread:$0]  %s49_s15, 1024, %s51_s19, [#allocation6], %s1780_s9, %s1780_s9, %s1781_s10  }
   0xd   :  { %71 = dma.hbm_to_vmem [thread:$0]  %s64_s17, 1024, %s66_s20, [#allocation9], %s1780_s9, %s1780_s9, %s1781_s10  }
   0xe   :  { %1771 = dma.done.wait [#allocation3], 4096  }
   0xf   :  { %1772 = vsyncadd [#allocation3], 4294963200 }
  0x10   :  { %1773 = dma.done.wait [#allocation6], 2048  }
  0x11   :  { %1774 = vsyncadd [#allocation6], 4294965248 }
  0x12   :  { %1775 = dma.done.wait [#allocation9], 1024  }
  0x13   :  { %1776 = vsyncadd [#allocation9], 4294966272  ;;  %v1597_v0 = vld [vmem:[#allocation5 + $0x38] sm:$0xff]  ;;  %v1596_v1 = vld [vmem:[#allocation5 + $0x30] sm:$0xff]  ;;  %s1319_s28 = sshll.u32 %s2054_s7, 4  ;;  %s1786_s29 = smov 128   ;;  %s1320_s28 = int_to_ptr.hbm [resolvable:$true] %s1319_s28 }
  0x14   :  { %414 = vmatpush.bf16.msra.mxu0 %v1597_v0  ;;  %1614 = vmatpush.bf16.msra.mxu3 %v1597_v0  ;;  %v1595_v2 = vld [vmem:[#allocation5 + $0x28] sm:$0xff]  ;;  %v1594_v3 = vld [vmem:[#allocation5 + $0x20] sm:$0xff]  ;;  %v1593_v4 = vld [vmem:[#allocation5 + $0x18] sm:$0xff]  ;;  %s1787_s30 = smov 8  }
  0x15   :  { %v1592_v5 = vld [vmem:[#allocation5 + $0x10] sm:$0xff]  ;;  %v1591_v6 = vld [vmem:[#allocation5 + $0x8] sm:$0xff]  ;;  %v1590_v7 = vld [vmem:[#allocation5] sm:$0xff] }
  0x16   :  { %v1558_v8 = vld [vmem:[#allocation2] sm:$0xff]  ;;  %v1559_v9 = vld [vmem:[#allocation2 + $0x8] sm:$0xff]  ;;  %v1560_v10 = vld [vmem:[#allocation2 + $0x10] sm:$0xff] }
  0x17   :  { %v1561_v11 = vld [vmem:[#allocation2 + $0x18] sm:$0xff]  ;;  %v1562_v12 = vld [vmem:[#allocation2 + $0x20] sm:$0xff]  ;;  %v1563_v14 = vld [vmem:[#allocation2 + $0x28] sm:$0xff] }
  0x18   :  { %415 = vmatpush.bf16.msra.mxu0 %v1596_v1  ;;  %1615 = vmatpush.bf16.msra.mxu3 %v1596_v1  ;;  %v1605_v13 = vld [vmem:[#allocation7 + $0x38] sm:$0xff]  ;;  %v1604_v15 = vld [vmem:[#allocation7 + $0x30] sm:$0xff]  ;;  %v1603_v16 = vld [vmem:[#allocation7 + $0x28] sm:$0xff] }
  0x19   :  { %747 = vmatpush.bf16.msra.mxu1 %v1605_v13  ;;  %v1602_v17 = vld [vmem:[#allocation7 + $0x20] sm:$0xff]  ;;  %v1601_v18 = vld [vmem:[#allocation7 + $0x18] sm:$0xff]  ;;  %v1564_v19 = vld [vmem:[#allocation2 + $0x30] sm:$0xff] }
  0x1a   :  { %v1600_v20 = vld [vmem:[#allocation7 + $0x10] sm:$0xff]  ;;  %v1599_v21 = vld [vmem:[#allocation7 + $0x8] sm:$0xff]  ;;  %v1598_v22 = vld [vmem:[#allocation7] sm:$0xff] }
  0x1b   :  { %v1565_v23 = vld [vmem:[#allocation2 + $0x38] sm:$0xff]  ;;  %v1566_v24 = vld [vmem:[#allocation2 + $0x40] sm:$0xff]  ;;  %v1567_v33 = vld [vmem:[#allocation2 + $0x48] sm:$0xff] }
  0x1c   :  { %416 = vmatpush.bf16.msra.mxu0 %v1595_v2  ;;  %1616 = vmatpush.bf16.msra.mxu3 %v1595_v2  ;;  %v1843_v26 = vld [vmem:[%s2049_s2] ss:$0 sm:$0xff]  ;;  %v1568_v41 = vld [vmem:[#allocation2 + $0x50] sm:$0xff]  ;;  %v1569_v49 = vld [vmem:[#allocation2 + $0x58] sm:$0xff] }
  0x1d   :  { %748 = vmatpush.bf16.msra.mxu1 %v1604_v15  ;;  %v1582_v56 = vld [vmem:[#allocation2 + $0xc0] sm:$0xff]  ;;  %v1583_v1 = vld [vmem:[#allocation2 + $0xc8] sm:$0xff] }
  0x1e   :  { %v1570_v58 = vld [vmem:[#allocation2 + $0x60] sm:$0xff] }
  0x20   :  { %417 = vmatpush.bf16.msra.mxu0 %v1594_v3  ;;  %1617 = vmatpush.bf16.msra.mxu3 %v1594_v3  ;;  %v1571_v3 = vld [vmem:[#allocation2 + $0x68] sm:$0xff] }
  0x21   :  { %749 = vmatpush.bf16.msra.mxu1 %v1603_v16 }
  0x24   :  { %418 = vmatpush.bf16.msra.mxu0 %v1593_v4  ;;  %1618 = vmatpush.bf16.msra.mxu3 %v1593_v4 }
  0x25   :  { %750 = vmatpush.bf16.msra.mxu1 %v1602_v17 }
  0x28   :  { %419 = vmatpush.bf16.msra.mxu0 %v1592_v5  ;;  %1619 = vmatpush.bf16.msra.mxu3 %v1592_v5 }
  0x29   :  { %751 = vmatpush.bf16.msra.mxu1 %v1601_v18 }
  0x2c   :  { %420 = vmatpush.bf16.msra.mxu0 %v1591_v6  ;;  %1620 = vmatpush.bf16.msra.mxu3 %v1591_v6 }
  0x2d   :  { %752 = vmatpush.bf16.msra.mxu1 %v1600_v20 }
  0x30   :  { %421 = vmatpush.bf16.msra.mxu0 %v1590_v7  ;;  %1621 = vmatpush.bf16.msra.mxu3 %v1590_v7 }
  0x31   :  { %753 = vmatpush.bf16.msra.mxu1 %v1599_v21 }
  0x33   :  { %422 = vmatmul.bf16.vlgmr.msra.gmra.mxu0 %v1558_v8  ;;  %542 = vmatmul.bf16.vlgmr.msra.gmra.mxu3 %v1582_v56  ;;  %v1613_v8 = vld [vmem:[#allocation8 + $0x38] sm:$0xff] }
  0x34   :  { %1622 = vmatpush.bf16.msrb.mxu3 %v1605_v13  ;;  %1080 = vmatpush.bf16.msra.mxu2 %v1613_v8  ;;  %v1612_v13 = vld [vmem:[#allocation8 + $0x30] sm:$0xff] }
  0x35   :  { %754 = vmatpush.bf16.msra.mxu1 %v1598_v22 }
  0x38   :  { %1623 = vmatpush.bf16.msrb.mxu3 %v1604_v15  ;;  %1081 = vmatpush.bf16.msra.mxu2 %v1612_v13 }
  0x3c   :  { %1624 = vmatpush.bf16.msrb.mxu3 %v1603_v16  ;;  %v1611_v16 = vld [vmem:[#allocation8 + $0x28] sm:$0xff] }
  0x3d   :  { %1082 = vmatpush.bf16.msra.mxu2 %v1611_v16 }
  0x40   :  { %1625 = vmatpush.bf16.msrb.mxu3 %v1602_v17  ;;  %v1610_v17 = vld [vmem:[#allocation8 + $0x20] sm:$0xff] }
  0x41   :  { %1083 = vmatpush.bf16.msra.mxu2 %v1610_v17 }
  0x43   :  { %427 = vmatmul.bf16.gmra.mxu0 %v1559_v9  ;;  %547 = vmatmul.bf16.gmra.mxu3 %v1583_v1  ;;  %v1588_v1 = vld [vmem:[#allocation2 + $0xf0] sm:$0xff] }
  0x44   :  { %1626 = vmatpush.bf16.msrb.mxu3 %v1601_v18 }
  0x48   :  { %1627 = vmatpush.bf16.msrb.mxu3 %v1600_v20 }
  0x4c   :  { %1628 = vmatpush.bf16.msrb.mxu3 %v1599_v21  ;;  %v1609_v21 = vld [vmem:[#allocation8 + $0x18] sm:$0xff] }
  0x4d   :  { %1084 = vmatpush.bf16.msra.mxu2 %v1609_v21 }
  0x50   :  { %1629 = vmatpush.bf16.msrb.mxu3 %v1598_v22 }
  0x53   :  { %432 = vmatmul.bf16.gmra.mxu0 %v1560_v10 }
  0x54   :  { %1630 = vmatpush.bf16.msra.mxu3 %v1613_v8 }
  0x58   :  { %1631 = vmatpush.bf16.msra.mxu3 %v1612_v13 }
  0x5c   :  { %1632 = vmatpush.bf16.msra.mxu3 %v1611_v16 }
  0x60   :  { %1633 = vmatpush.bf16.msra.mxu3 %v1610_v17  ;;  %v1589_v17 = vld [vmem:[#allocation2 + $0xf8] sm:$0xff] }
  0x63   :  { %437 = vmatmul.bf16.gmra.mxu0 %v1561_v11  ;;  %v1584_v11 = vld [vmem:[#allocation2 + $0xd0] sm:$0xff] }
  0x64   :  { %552 = vmatmul.bf16.gmra.mxu3 %v1584_v11 }
  0x65   :  { %1634 = vmatpush.bf16.msra.mxu3 %v1609_v21 }
  0x73   :  { %442 = vmatmul.bf16.gmra.mxu0 %v1562_v12 }
  0x83   :  { %447 = vmatmul.bf16.gmra.mxu0 %v1563_v14  ;;  %v1572_v14 = vld [vmem:[#allocation2 + $0x70] sm:$0xff] }
  0x93   :  { %452 = vmatmul.bf16.gmra.mxu0 %v1564_v19 }
  0xa3   :  { %457 = vmatmul.bf16.gmra.mxu0 %v1565_v23 }
  0xb0   :  { %v423_v25 = vpop.f32.mrf.mxu0 }
  0xb1   :  { %v424_v27 = vadd.f32 %v1843_v26, %v423_v25  ;;  %v1585_v25 = vld [vmem:[#allocation2 + $0xd8] sm:$0xff] }
  0xb2   :  { %557 = vmatmul.bf16.gmra.mxu3 %v1585_v25 }
  0xb3   :  { %462 = vmatmul.bf16.gmra.mxu0 %v1566_v24  ;;  %v583_v30 = vmax.f32 %v424_v27, 0.0  ;;  %v1608_v27 = vld [vmem:[#allocation8 + $0x10] sm:$0xff] }
  0xb4   :  { %1085 = vmatpush.bf16.msra.mxu2 %v1608_v27  ;;  %1635 = vmatpush.bf16.msra.mxu3 %v1608_v27 }
  0xb8   :  { %v425_v28 = vpop.f32.mrf.mxu0 }
  0xb9   :  { %v426_v29 = vadd.f32 %v1843_v26, %v425_v28  ;;  %v1573_v28 = vld [vmem:[#allocation2 + $0x78] sm:$0xff] }
  0xbb   :  { %v584_v31 = vmax.f32 %v426_v29, 0.0 }
  0xbd   :  { %v647_v32 = vpack.c.bf16 %v584_v31, %v583_v30  ;;  %v1607_v30 = vld [vmem:[#allocation8 + $0x8] sm:$0xff]  ;;  %v1606_v31 = vld [vmem:[#allocation8] sm:$0xff] }
  0xbe   :  { %1086 = vmatpush.bf16.msra.mxu2 %v1607_v30  ;;  %1636 = vmatpush.bf16.msra.mxu3 %v1607_v30 }
  0xbf   :  { %755 = vmatmul.bf16.vlgmr.msra.gmra.mxu1 %v647_v32 }
  0xc0   :  { %v428_v34 = vpop.f32.mrf.mxu0 }
  0xc1   :  { %v429_v35 = vadd.f32 %v1843_v26, %v428_v34 }
  0xc2   :  { %1087 = vmatpush.bf16.msra.mxu2 %v1606_v31  ;;  %1637 = vmatpush.bf16.msra.mxu3 %v1606_v31 }
  0xc3   :  { %467 = vmatmul.bf16.gmra.mxu0 %v1567_v33  ;;  %v585_v38 = vmax.f32 %v429_v35, 0.0 }
  0xc8   :  { %v430_v36 = vpop.f32.mrf.mxu0 }
  0xc9   :  { %v431_v37 = vadd.f32 %v1843_v26, %v430_v36 }
  0xcb   :  { %v586_v39 = vmax.f32 %v431_v37, 0.0 }
  0xcd   :  { %v648_v40 = vpack.c.bf16 %v586_v39, %v585_v38  ;;  %v1586_v38 = vld [vmem:[#allocation2 + $0xe0] sm:$0xff] }
  0xce   :  { %v1574_v39 = vld [vmem:[#allocation2 + $0x80] sm:$0xff]  ;;  %562 = vmatmul.bf16.gmra.mxu3 %v1586_v38 }
  0xcf   :  { %760 = vmatmul.bf16.gmra.mxu1 %v648_v40 }
  0xd0   :  { %v433_v42 = vpop.f32.mrf.mxu0 }
  0xd1   :  { %v434_v43 = vadd.f32 %v1843_v26, %v433_v42 }
  0xd3   :  { %472 = vmatmul.bf16.gmra.mxu0 %v1568_v41  ;;  %v587_v46 = vmax.f32 %v434_v43, 0.0 }
  0xd8   :  { %v435_v44 = vpop.f32.mrf.mxu0 }
  0xd9   :  { %v436_v45 = vadd.f32 %v1843_v26, %v435_v44 }
  0xdb   :  { %v588_v47 = vmax.f32 %v436_v45, 0.0 }
  0xdd   :  { %v649_v48 = vpack.c.bf16 %v588_v47, %v587_v46 }
  0xdf   :  { %765 = vmatmul.bf16.gmra.mxu1 %v649_v48  ;;  %v1587_v48 = vld [vmem:[#allocation2 + $0xe8] sm:$0xff] }
  0xe0   :  { %v438_v50 = vpop.f32.mrf.mxu0  ;;  %567 = vmatmul.bf16.gmra.mxu3 %v1587_v48 }
  0xe1   :  { %v439_v51 = vadd.f32 %v1843_v26, %v438_v50  ;;  %v1575_v50 = vld [vmem:[#allocation2 + $0x88] sm:$0xff] }
  0xe3   :  { %477 = vmatmul.bf16.gmra.mxu0 %v1569_v49  ;;  %v589_v54 = vmax.f32 %v439_v51, 0.0  ;;  %v1866_v49 = vld [vmem:[%s2051_s4] ss:$0 sm:$0xff] }
  0xe8   :  { %v440_v52 = vpop.f32.mrf.mxu0 }
  0xe9   :  { %v441_v53 = vadd.f32 %v1843_v26, %v440_v52 }
  0xeb   :  { %v590_v55 = vmax.f32 %v441_v53, 0.0 }
  0xed   :  { %v650_v57 = vpack.c.bf16 %v590_v55, %v589_v54 }
  0xef   :  { %770 = vmatmul.bf16.gmra.mxu1 %v650_v57 }
  0xf0   :  { %v443_v59 = vpop.f32.mrf.mxu0  ;;  %572 = vmatmul.bf16.gmra.mxu3 %v1588_v1 }
  0xf1   :  { %v444_v60 = vadd.f32 %v1843_v26, %v443_v59 }
  0xf3   :  { %482 = vmatmul.bf16.gmra.mxu0 %v1570_v58  ;;  %v591_v63 = vmax.f32 %v444_v60, 0.0 }
  0xf8   :  { %v445_v61 = vpop.f32.mrf.mxu0 }
  0xf9   :  { %v446_v62 = vadd.f32 %v1843_v26, %v445_v61 }
  0xfb   :  { %v592_v0 = vmax.f32 %v446_v62, 0.0 }
  0xfd   :  { %v651_v2 = vpack.c.bf16 %v592_v0, %v591_v63 }
  0xff   :  { %775 = vmatmul.bf16.gmra.mxu1 %v651_v2  ;;  %v1576_v2 = vld [vmem:[#allocation2 + $0x90] sm:$0xff] }
 0x100   :  { %v448_v4 = vpop.f32.mrf.mxu0  ;;  %577 = vmatmul.bf16.gmra.mxu3 %v1589_v17 }
 0x101   :  { %v449_v5 = vadd.f32 %v1843_v26, %v448_v4 }
 0x103   :  { %487 = vmatmul.bf16.gmra.mxu0 %v1571_v3  ;;  %v593_v9 = vmax.f32 %v449_v5, 0.0 }
 0x108   :  { %v450_v6 = vpop.f32.mrf.mxu0 }
 0x109   :  { %v451_v7 = vadd.f32 %v1843_v26, %v450_v6 }
 0x10b   :  { %v594_v10 = vmax.f32 %v451_v7, 0.0 }
 0x10d   :  { %v652_v12 = vpack.c.bf16 %v594_v10, %v593_v9 }
 0x10f   :  { %780 = vmatmul.bf16.gmra.mxu1 %v652_v12 }
 0x110   :  { %v453_v15 = vpop.f32.mrf.mxu0 }
 0x111   :  { %v454_v18 = vadd.f32 %v1843_v26, %v453_v15 }
 0x113   :  { %492 = vmatmul.bf16.gmra.mxu0 %v1572_v14  ;;  %v595_v22 = vmax.f32 %v454_v18, 0.0  ;;  %v1577_v18 = vld [vmem:[#allocation2 + $0x98] sm:$0xff] }
 0x118   :  { %v455_v19 = vpop.f32.mrf.mxu0 }
 0x119   :  { %v456_v20 = vadd.f32 %v1843_v26, %v455_v19 }
 0x11b   :  { %v596_v23 = vmax.f32 %v456_v20, 0.0 }
 0x11d   :  { %v653_v24 = vpack.c.bf16 %v596_v23, %v595_v22 }
 0x11f   :  { %785 = vmatmul.bf16.gmra.mxu1 %v653_v24 }
 0x120   :  { %v458_v29 = vpop.f32.mrf.mxu0 }
 0x121   :  { %v459_v32 = vadd.f32 %v1843_v26, %v458_v29 }
 0x123   :  { %497 = vmatmul.bf16.gmra.mxu0 %v1573_v28  ;;  %v597_v35 = vmax.f32 %v459_v32, 0.0 }
 0x128   :  { %v460_v33 = vpop.f32.mrf.mxu0 }
 0x129   :  { %v461_v34 = vadd.f32 %v1843_v26, %v460_v33 }
 0x12b   :  { %v598_v36 = vmax.f32 %v461_v34, 0.0  ;;  %v1578_v34 = vld [vmem:[#allocation2 + $0xa0] sm:$0xff] }
 0x12d   :  { %v654_v37 = vpack.c.bf16 %v598_v36, %v597_v35  ;;  %v543_v36 = vpop.f32.mrf.mxu3 }
 0x12f   :  { %790 = vmatmul.bf16.gmra.mxu1 %v654_v37 }
 0x130   :  { %v463_v40 = vpop.f32.mrf.mxu0 }
 0x131   :  { %v464_v41 = vadd.f32 %v1843_v26, %v463_v40 }
 0x133   :  { %502 = vmatmul.bf16.gmra.mxu0 %v1574_v39  ;;  %v599_v44 = vmax.f32 %v464_v41, 0.0 }
 0x138   :  { %v465_v42 = vpop.f32.mrf.mxu0 }
 0x139   :  { %v466_v43 = vadd.f32 %v1843_v26, %v465_v42 }
 0x13b   :  { %v600_v45 = vmax.f32 %v466_v43, 0.0  ;;  %v544_v43 = vadd.f32 %v1843_v26, %v543_v36 }
 0x13c   :  { %v756_v46 = vpop.f32.mrf.mxu1 }
 0x13d   :  { %v655_v47 = vpack.c.bf16 %v600_v45, %v599_v44  ;;  %v757_v52 = vadd.f32 %v1866_v49, %v756_v46 }
 0x13f   :  { %795 = vmatmul.bf16.gmra.mxu1 %v655_v47  ;;  %v916_v55 = vmax.f32 %v757_v52, 0.0  ;;  %v545_v47 = vpop.f32.mrf.mxu3 }
 0x140   :  { %v468_v51 = vpop.f32.mrf.mxu0  ;;  %v546_v52 = vadd.f32 %v1843_v26, %v545_v47 }
 0x141   :  { %v469_v56 = vadd.f32 %v1843_v26, %v468_v51  ;;  %v631_v51 = vmax.f32 %v544_v43, 0.0 }
 0x143   :  { %507 = vmatmul.bf16.gmra.mxu0 %v1575_v50  ;;  %v601_v61 = vmax.f32 %v469_v56, 0.0  ;;  %v1579_v56 = vld [vmem:[#allocation2 + $0xa8] sm:$0xff] }
 0x144   :  { %v758_v53 = vpop.f32.mrf.mxu1 }
 0x145   :  { %v759_v54 = vadd.f32 %v1866_v49, %v758_v53 }
 0x147   :  { %v917_v57 = vmax.f32 %v759_v54, 0.0 }
 0x148   :  { %v470_v58 = vpop.f32.mrf.mxu0 }
 0x149   :  { %v471_v59 = vadd.f32 %v1843_v26, %v470_v58  ;;  %v980_v60 = vpack.c.bf16 %v917_v57, %v916_v55  ;;  %v632_v55 = vmax.f32 %v546_v52, 0.0 }
 0x14b   :  { %v602_v62 = vmax.f32 %v471_v59, 0.0  ;;  %1088 = vmatmul.bf16.vlgmr.msra.gmra.mxu2 %v980_v60  ;;  %v671_v57 = vpack.c.bf16 %v632_v55, %v631_v51  ;;  %v548_v59 = vpop.f32.mrf.mxu3 }
 0x14c   :  { %v761_v63 = vpop.f32.mrf.mxu1 }
 0x14d   :  { %v656_v0 = vpack.c.bf16 %v602_v62, %v601_v61  ;;  %v762_v4 = vadd.f32 %v1866_v49, %v761_v63  ;;  %875 = vmatmul.bf16.vlgmr.msrb.gmra.mxu3 %v671_v57 }
 0x14f   :  { %800 = vmatmul.bf16.gmra.mxu1 %v656_v0  ;;  %v918_v7 = vmax.f32 %v762_v4, 0.0 }
 0x150   :  { %v473_v3 = vpop.f32.mrf.mxu0 }
 0x151   :  { %v474_v8 = vadd.f32 %v1843_v26, %v473_v3 }
 0x153   :  { %512 = vmatmul.bf16.gmra.mxu0 %v1576_v2  ;;  %v603_v13 = vmax.f32 %v474_v8, 0.0  ;;  %v549_v2 = vadd.f32 %v1843_v26, %v548_v59 }
 0x154   :  { %v763_v5 = vpop.f32.mrf.mxu1 }
 0x155   :  { %v764_v6 = vadd.f32 %v1866_v49, %v763_v5 }
 0x157   :  { %v919_v9 = vmax.f32 %v764_v6, 0.0  ;;  %v550_v6 = vpop.f32.mrf.mxu3 }
 0x158   :  { %v475_v10 = vpop.f32.mrf.mxu0 }
 0x159   :  { %v476_v11 = vadd.f32 %v1843_v26, %v475_v10  ;;  %v981_v12 = vpack.c.bf16 %v919_v9, %v918_v7  ;;  %v633_v9 = vmax.f32 %v549_v2, 0.0  ;;  %v551_v10 = vadd.f32 %v1843_v26, %v550_v6 }
 0x15b   :  { %v604_v14 = vmax.f32 %v476_v11, 0.0  ;;  %1093 = vmatmul.bf16.gmra.mxu2 %v981_v12 }
 0x15c   :  { %v766_v15 = vpop.f32.mrf.mxu1 }
 0x15d   :  { %v657_v16 = vpack.c.bf16 %v604_v14, %v603_v13  ;;  %v767_v20 = vadd.f32 %v1866_v49, %v766_v15  ;;  %v634_v13 = vmax.f32 %v551_v10, 0.0  ;;  %v1580_v14 = vld [vmem:[#allocation2 + $0xb0] sm:$0xff] }
 0x15f   :  { %805 = vmatmul.bf16.gmra.mxu1 %v657_v16  ;;  %v920_v23 = vmax.f32 %v767_v20, 0.0  ;;  %v672_v15 = vpack.c.bf16 %v634_v13, %v633_v9  ;;  %v553_v17 = vpop.f32.mrf.mxu3 }
 0x160   :  { %v478_v19 = vpop.f32.mrf.mxu0 }
 0x161   :  { %v479_v24 = vadd.f32 %v1843_v26, %v478_v19  ;;  %880 = vmatmul.bf16.gmra.mxu3 %v672_v15 }
 0x163   :  { %517 = vmatmul.bf16.gmra.mxu0 %v1577_v18  ;;  %v605_v30 = vmax.f32 %v479_v24, 0.0  ;;  %v554_v24 = vadd.f32 %v1843_v26, %v553_v17 }
 0x164   :  { %v768_v21 = vpop.f32.mrf.mxu1 }
 0x165   :  { %v769_v22 = vadd.f32 %v1866_v49, %v768_v21 }
 0x167   :  { %v921_v25 = vmax.f32 %v769_v22, 0.0 }
 0x168   :  { %v480_v27 = vpop.f32.mrf.mxu0 }
 0x169   :  { %v481_v28 = vadd.f32 %v1843_v26, %v480_v27  ;;  %v982_v29 = vpack.c.bf16 %v921_v25, %v920_v23 }
 0x16b   :  { %v606_v31 = vmax.f32 %v481_v28, 0.0  ;;  %1098 = vmatmul.bf16.gmra.mxu2 %v982_v29  ;;  %v555_v29 = vpop.f32.mrf.mxu3 }
 0x16c   :  { %v771_v32 = vpop.f32.mrf.mxu1 }
 0x16d   :  { %v658_v33 = vpack.c.bf16 %v606_v31, %v605_v30  ;;  %v772_v37 = vadd.f32 %v1866_v49, %v771_v32  ;;  %v635_v32 = vmax.f32 %v554_v24, 0.0 }
 0x16f   :  { %810 = vmatmul.bf16.gmra.mxu1 %v658_v33  ;;  %v922_v40 = vmax.f32 %v772_v37, 0.0  ;;  %v556_v33 = vadd.f32 %v1843_v26, %v555_v29  ;;  %v1581_v37 = vld [vmem:[#allocation2 + $0xb8] sm:$0xff] }
 0x170   :  { %v483_v35 = vpop.f32.mrf.mxu0 }
 0x171   :  { %v484_v41 = vadd.f32 %v1843_v26, %v483_v35  ;;  %v636_v36 = vmax.f32 %v556_v33, 0.0 }
 0x173   :  { %522 = vmatmul.bf16.gmra.mxu0 %v1578_v34  ;;  %v607_v48 = vmax.f32 %v484_v41, 0.0 }
 0x174   :  { %v773_v38 = vpop.f32.mrf.mxu1 }
 0x175   :  { %v774_v39 = vadd.f32 %v1866_v49, %v773_v38  ;;  %v673_v38 = vpack.c.bf16 %v636_v36, %v635_v32 }
 0x177   :  { %v923_v42 = vmax.f32 %v774_v39, 0.0  ;;  %885 = vmatmul.bf16.gmra.mxu3 %v673_v38 }
 0x178   :  { %v485_v44 = vpop.f32.mrf.mxu0 }
 0x179   :  { %v486_v45 = vadd.f32 %v1843_v26, %v485_v44  ;;  %v983_v46 = vpack.c.bf16 %v923_v42, %v922_v40  ;;  %v558_v40 = vpop.f32.mrf.mxu3 }
 0x17a   :  { %v559_v47 = vadd.f32 %v1843_v26, %v558_v40 }
 0x17b   :  { %v608_v50 = vmax.f32 %v486_v45, 0.0  ;;  %1103 = vmatmul.bf16.gmra.mxu2 %v983_v46 }
 0x17c   :  { %v776_v53 = vpop.f32.mrf.mxu1  ;;  %v637_v55 = vmax.f32 %v559_v47, 0.0 }
 0x17d   :  { %v659_v54 = vpack.c.bf16 %v608_v50, %v607_v48  ;;  %v777_v60 = vadd.f32 %v1866_v49, %v776_v53 }
 0x17f   :  { %815 = vmatmul.bf16.gmra.mxu1 %v659_v54  ;;  %v924_v63 = vmax.f32 %v777_v60, 0.0 }
 0x180   :  { %v488_v58 = vpop.f32.mrf.mxu0 }
 0x181   :  { %v489_v0 = vadd.f32 %v1843_v26, %v488_v58  ;;  %v560_v52 = vpop.f32.mrf.mxu3 }
 0x183   :  { %527 = vmatmul.bf16.gmra.mxu0 %v1579_v56  ;;  %v609_v7 = vmax.f32 %v489_v0, 0.0  ;;  %v561_v56 = vadd.f32 %v1843_v26, %v560_v52 }
 0x184   :  { %v778_v61 = vpop.f32.mrf.mxu1 }
 0x185   :  { %v779_v62 = vadd.f32 %v1866_v49, %v778_v61  ;;  %v638_v59 = vmax.f32 %v561_v56, 0.0 }
 0x187   :  { %v925_v1 = vmax.f32 %v779_v62, 0.0  ;;  %v674_v60 = vpack.c.bf16 %v638_v59, %v637_v55 }
 0x188   :  { %v490_v3 = vpop.f32.mrf.mxu0 }
 0x189   :  { %v491_v4 = vadd.f32 %v1843_v26, %v490_v3  ;;  %v984_v5 = vpack.c.bf16 %v925_v1, %v924_v63  ;;  %890 = vmatmul.bf16.gmra.mxu3 %v674_v60  ;;  %v563_v62 = vpop.f32.mrf.mxu3 }
 0x18b   :  { %v610_v8 = vmax.f32 %v491_v4, 0.0  ;;  %1108 = vmatmul.bf16.gmra.mxu2 %v984_v5  ;;  %v564_v5 = vadd.f32 %v1843_v26, %v563_v62 }
 0x18c   :  { %v781_v11 = vpop.f32.mrf.mxu1 }
 0x18d   :  { %v660_v12 = vpack.c.bf16 %v610_v8, %v609_v7  ;;  %v782_v18 = vadd.f32 %v1866_v49, %v781_v11 }
 0x18f   :  { %820 = vmatmul.bf16.gmra.mxu1 %v660_v12  ;;  %v926_v21 = vmax.f32 %v782_v18, 0.0  ;;  %v639_v12 = vmax.f32 %v564_v5, 0.0 }
 0x190   :  { %v493_v16 = vpop.f32.mrf.mxu0 }
 0x191   :  { %v494_v22 = vadd.f32 %v1843_v26, %v493_v16  ;;  %v565_v9 = vpop.f32.mrf.mxu3 }
 0x192   :  { %v566_v13 = vadd.f32 %v1843_v26, %v565_v9 }
 0x193   :  { %532 = vmatmul.bf16.gmra.mxu0 %v1580_v14  ;;  %v611_v30 = vmax.f32 %v494_v22, 0.0 }
 0x194   :  { %v783_v19 = vpop.f32.mrf.mxu1  ;;  %v640_v16 = vmax.f32 %v566_v13, 0.0 }
 0x195   :  { %v784_v20 = vadd.f32 %v1866_v49, %v783_v19 }
 0x196   :  { %v675_v17 = vpack.c.bf16 %v640_v16, %v639_v12 }
 0x197   :  { %v927_v23 = vmax.f32 %v784_v20, 0.0 }
 0x198   :  { %v495_v25 = vpop.f32.mrf.mxu0 }
 0x199   :  { %v496_v27 = vadd.f32 %v1843_v26, %v495_v25  ;;  %v985_v28 = vpack.c.bf16 %v927_v23, %v926_v21  ;;  %895 = vmatmul.bf16.gmra.mxu3 %v675_v17  ;;  %v568_v19 = vpop.f32.mrf.mxu3 }
 0x19b   :  { %v612_v31 = vmax.f32 %v496_v27, 0.0  ;;  %1113 = vmatmul.bf16.gmra.mxu2 %v985_v28  ;;  %v569_v27 = vadd.f32 %v1843_v26, %v568_v19 }
 0x19c   :  { %v786_v34 = vpop.f32.mrf.mxu1 }
 0x19d   :  { %v661_v35 = vpack.c.bf16 %v612_v31, %v611_v30  ;;  %v787_v41 = vadd.f32 %v1866_v49, %v786_v34  ;;  %v1918_v34 = vld [vmem:[%s2053_s6] ss:$0 sm:$0xff] }
 0x19f   :  { %825 = vmatmul.bf16.gmra.mxu1 %v661_v35  ;;  %v928_v44 = vmax.f32 %v787_v41, 0.0  ;;  %v641_v35 = vmax.f32 %v569_v27, 0.0 }
 0x1a0   :  { %v498_v39 = vpop.f32.mrf.mxu0 }
 0x1a1   :  { %v499_v45 = vadd.f32 %v1843_v26, %v498_v39  ;;  %v570_v31 = vpop.f32.mrf.mxu3 }
 0x1a2   :  { %v571_v36 = vadd.f32 %v1843_v26, %v570_v31 }
 0x1a3   :  { %537 = vmatmul.bf16.gmra.mxu0 %v1581_v37  ;;  %v613_v53 = vmax.f32 %v499_v45, 0.0 }
 0x1a4   :  { %v788_v42 = vpop.f32.mrf.mxu1  ;;  %v642_v39 = vmax.f32 %v571_v36, 0.0 }
 0x1a5   :  { %v789_v43 = vadd.f32 %v1866_v49, %v788_v42 }
 0x1a6   :  { %v676_v42 = vpack.c.bf16 %v642_v39, %v641_v35 }
 0x1a7   :  { %v929_v46 = vmax.f32 %v789_v43, 0.0 }
 0x1a8   :  { %v500_v48 = vpop.f32.mrf.mxu0 }
 0x1a9   :  { %v501_v50 = vadd.f32 %v1843_v26, %v500_v48  ;;  %v986_v51 = vpack.c.bf16 %v929_v46, %v928_v44  ;;  %900 = vmatmul.bf16.gmra.mxu3 %v676_v42  ;;  %v573_v45 = vpop.f32.mrf.mxu3 }
 0x1ab   :  { %v614_v54 = vmax.f32 %v501_v50, 0.0  ;;  %1118 = vmatmul.bf16.gmra.mxu2 %v986_v51 }
 0x1ac   :  { %v791_v57 = vpop.f32.mrf.mxu1 }
 0x1ad   :  { %v662_v58 = vpack.c.bf16 %v614_v54, %v613_v53  ;;  %v792_v63 = vadd.f32 %v1866_v49, %v791_v57  ;;  %v574_v54 = vadd.f32 %v1843_v26, %v573_v45 }
 0x1af   :  { %830 = vmatmul.bf16.gmra.mxu1 %v662_v58  ;;  %v930_v2 = vmax.f32 %v792_v63, 0.0 }
 0x1b0   :  { %v503_v61 = vpop.f32.mrf.mxu0 }
 0x1b1   :  { %v504_v3 = vadd.f32 %v1843_v26, %v503_v61  ;;  %v575_v58 = vpop.f32.mrf.mxu3  ;;  %v643_v61 = vmax.f32 %v574_v54, 0.0 }
 0x1b2   :  { %v576_v62 = vadd.f32 %v1843_v26, %v575_v58 }
 0x1b3   :  { %v615_v10 = vmax.f32 %v504_v3, 0.0 }
 0x1b4   :  { %v793_v0 = vpop.f32.mrf.mxu1 }
 0x1b5   :  { %v794_v1 = vadd.f32 %v1866_v49, %v793_v0 }
 0x1b7   :  { %v931_v4 = vmax.f32 %v794_v1, 0.0  ;;  %v644_v1 = vmax.f32 %v576_v62, 0.0 }
 0x1b8   :  { %v505_v6 = vpop.f32.mrf.mxu0 }
 0x1b9   :  { %v506_v7 = vadd.f32 %v1843_v26, %v505_v6  ;;  %v987_v8 = vpack.c.bf16 %v931_v4, %v930_v2  ;;  %v677_v4 = vpack.c.bf16 %v644_v1, %v643_v61 }
 0x1bb   :  { %v616_v11 = vmax.f32 %v506_v7, 0.0  ;;  %1123 = vmatmul.bf16.gmra.mxu2 %v987_v8  ;;  %905 = vmatmul.bf16.gmra.mxu3 %v677_v4  ;;  %v578_v7 = vpop.f32.mrf.mxu3 }
 0x1bc   :  { %v796_v14 = vpop.f32.mrf.mxu1 }
 0x1bd   :  { %v663_v15 = vpack.c.bf16 %v616_v11, %v615_v10  ;;  %v797_v20 = vadd.f32 %v1866_v49, %v796_v14 }
 0x1bf   :  { %835 = vmatmul.bf16.gmra.mxu1 %v663_v15  ;;  %v932_v23 = vmax.f32 %v797_v20, 0.0  ;;  %v579_v15 = vadd.f32 %v1843_v26, %v578_v7 }
 0x1c0   :  { %v508_v18 = vpop.f32.mrf.mxu0 }
 0x1c1   :  { %v509_v24 = vadd.f32 %v1843_v26, %v508_v18 }
 0x1c3   :  { %v617_v32 = vmax.f32 %v509_v24, 0.0  ;;  %v580_v19 = vpop.f32.mrf.mxu3 }
 0x1c4   :  { %v798_v21 = vpop.f32.mrf.mxu1 }
 0x1c5   :  { %v799_v22 = vadd.f32 %v1866_v49, %v798_v21 }
 0x1c7   :  { %v933_v25 = vmax.f32 %v799_v22, 0.0  ;;  %v645_v22 = vmax.f32 %v579_v15, 0.0 }
 0x1c8   :  { %v510_v28 = vpop.f32.mrf.mxu0 }
 0x1c9   :  { %v511_v29 = vadd.f32 %v1843_v26, %v510_v28  ;;  %v988_v30 = vpack.c.bf16 %v933_v25, %v932_v23  ;;  %v581_v23 = vadd.f32 %v1843_v26, %v580_v19 }
 0x1cb   :  { %v618_v33 = vmax.f32 %v511_v29, 0.0  ;;  %1128 = vmatmul.bf16.gmra.mxu2 %v988_v30  ;;  %v646_v27 = vmax.f32 %v581_v23, 0.0 }
 0x1cc   :  { %v801_v37 = vpop.f32.mrf.mxu1 }
 0x1cd   :  { %v664_v38 = vpack.c.bf16 %v618_v33, %v617_v32  ;;  %v802_v44 = vadd.f32 %v1866_v49, %v801_v37  ;;  %v678_v30 = vpack.c.bf16 %v646_v27, %v645_v22 }
 0x1ce   :  { %v1089_v40 = vpop.f32.mrf.mxu2 }
 0x1cf   :  { %v1090_v41 = vadd.f32 %v1918_v34, %v1089_v40  ;;  %840 = vmatmul.bf16.gmra.mxu1 %v664_v38  ;;  %v934_v48 = vmax.f32 %v802_v44, 0.0  ;;  %910 = vmatmul.bf16.gmra.mxu3 %v678_v30 }
 0x1d0   :  { %v513_v43 = vpop.f32.mrf.mxu0  ;;  %v876_v54 = vpop.f32.mrf.mxu3 }
 0x1d1   :  { %1249 = vst [vmem:[#allocation10] sm:$0xff] %v1090_v41  ;;  %v514_v51 = vadd.f32 %v1843_v26, %v513_v43 }
 0x1d3   :  { %v619_v59 = vmax.f32 %v514_v51, 0.0 }
 0x1d4   :  { %v803_v46 = vpop.f32.mrf.mxu1 }
 0x1d5   :  { %v804_v47 = vadd.f32 %v1866_v49, %v803_v46 }
 0x1d6   :  { %v1091_v50 = vpop.f32.mrf.mxu2 }
 0x1d7   :  { %v935_v52 = vmax.f32 %v804_v47, 0.0  ;;  %v1092_v53 = vadd.f32 %v1918_v34, %v1091_v50 }
 0x1d8   :  { %v515_v55 = vpop.f32.mrf.mxu0  ;;  %v878_v4 = vpop.f32.mrf.mxu3 }
 0x1d9   :  { %1250 = vst [vmem:[#allocation10 + $0x8] sm:$0xff] %v1092_v53  ;;  %v516_v56 = vadd.f32 %v1843_v26, %v515_v55  ;;  %v989_v57 = vpack.c.bf16 %v935_v52, %v934_v48  ;;  %v879_v7 = vadd.f32 %v1866_v49, %v878_v4 }
 0x1db   :  { %v620_v60 = vmax.f32 %v516_v56, 0.0  ;;  %1133 = vmatmul.bf16.gmra.mxu2 %v989_v57 }
 0x1dc   :  { %v806_v63 = vpop.f32.mrf.mxu1 }
 0x1dd   :  { %v665_v0 = vpack.c.bf16 %v620_v60, %v619_v59  ;;  %v807_v6 = vadd.f32 %v1866_v49, %v806_v63 }
 0x1de   :  { %v1094_v2 = vpop.f32.mrf.mxu2 }
 0x1df   :  { %v1095_v3 = vadd.f32 %v1918_v34, %v1094_v2  ;;  %845 = vmatmul.bf16.gmra.mxu1 %v665_v0  ;;  %v936_v10 = vmax.f32 %v807_v6, 0.0  ;;  %v877_v0 = vadd.f32 %v1866_v49, %v876_v54 }
 0x1e0   :  { %v518_v5 = vpop.f32.mrf.mxu0 }
 0x1e1   :  { %1251 = vst [vmem:[#allocation10 + $0x10] sm:$0xff] %v1095_v3  ;;  %v519_v12 = vadd.f32 %v1843_v26, %v518_v5  ;;  %v964_v6 = vmax.f32 %v877_v0, 0.0 }
 0x1e3   :  { %v621_v20 = vmax.f32 %v519_v12, 0.0 }
 0x1e4   :  { %v808_v8 = vpop.f32.mrf.mxu1  ;;  %v881_v15 = vpop.f32.mrf.mxu3 }
 0x1e5   :  { %v809_v9 = vadd.f32 %v1866_v49, %v808_v8 }
 0x1e6   :  { %v1096_v11 = vpop.f32.mrf.mxu2 }
 0x1e7   :  { %v937_v13 = vmax.f32 %v809_v9, 0.0  ;;  %v1097_v14 = vadd.f32 %v1918_v34, %v1096_v11 }
 0x1e8   :  { %v520_v16 = vpop.f32.mrf.mxu0 }
 0x1e9   :  { %1252 = vst [vmem:[#allocation10 + $0x18] sm:$0xff] %v1097_v14  ;;  %v521_v17 = vadd.f32 %v1843_v26, %v520_v16  ;;  %v990_v18 = vpack.c.bf16 %v937_v13, %v936_v10  ;;  %v965_v10 = vmax.f32 %v879_v7, 0.0 }
 0x1eb   :  { %v622_v21 = vmax.f32 %v521_v17, 0.0  ;;  %1138 = vmatmul.bf16.gmra.mxu2 %v990_v18  ;;  %v1004_v12 = vpack.c.bf16 %v965_v10, %v964_v6 }
 0x1ec   :  { %v811_v24 = vpop.f32.mrf.mxu1  ;;  %v883_v30 = vpop.f32.mrf.mxu3 }
 0x1ed   :  { %v666_v25 = vpack.c.bf16 %v622_v21, %v621_v20  ;;  %v812_v32 = vadd.f32 %v1866_v49, %v811_v24  ;;  %1208 = vmatmul.bf16.vlgmr.msra.gmra.mxu3 %v1004_v12 }
 0x1ee   :  { %v1099_v28 = vpop.f32.mrf.mxu2 }
 0x1ef   :  { %v1100_v29 = vadd.f32 %v1918_v34, %v1099_v28  ;;  %850 = vmatmul.bf16.gmra.mxu1 %v666_v25  ;;  %v938_v37 = vmax.f32 %v812_v32, 0.0  ;;  %v882_v25 = vadd.f32 %v1866_v49, %v881_v15 }
 0x1f0   :  { %v523_v31 = vpop.f32.mrf.mxu0 }
 0x1f1   :  { %1253 = vst [vmem:[#allocation10 + $0x20] sm:$0xff] %v1100_v29  ;;  %v524_v38 = vadd.f32 %v1843_v26, %v523_v31  ;;  %v966_v32 = vmax.f32 %v882_v25, 0.0 }
 0x1f3   :  { %v623_v44 = vmax.f32 %v524_v38, 0.0 }
 0x1f4   :  { %v813_v33 = vpop.f32.mrf.mxu1 }
 0x1f5   :  { %v814_v35 = vadd.f32 %v1866_v49, %v813_v33  ;;  %v884_v33 = vadd.f32 %v1866_v49, %v883_v30 }
 0x1f6   :  { %v1101_v36 = vpop.f32.mrf.mxu2 }
 0x1f7   :  { %v939_v39 = vmax.f32 %v814_v35, 0.0  ;;  %v1102_v40 = vadd.f32 %v1918_v34, %v1101_v36 }
 0x1f8   :  { %v525_v41 = vpop.f32.mrf.mxu0 }
 0x1f9   :  { %1254 = vst [vmem:[#allocation10 + $0x28] sm:$0xff] %v1102_v40  ;;  %v526_v42 = vadd.f32 %v1843_v26, %v525_v41  ;;  %v991_v43 = vpack.c.bf16 %v939_v39, %v938_v37  ;;  %v967_v37 = vmax.f32 %v884_v33, 0.0 }
 0x1fb   :  { %v624_v45 = vmax.f32 %v526_v42, 0.0  ;;  %1143 = vmatmul.bf16.gmra.mxu2 %v991_v43  ;;  %v1005_v39 = vpack.c.bf16 %v967_v37, %v966_v32  ;;  %v886_v42 = vpop.f32.mrf.mxu3 }
 0x1fc   :  { %v816_v46 = vpop.f32.mrf.mxu1 }
 0x1fd   :  { %v667_v47 = vpack.c.bf16 %v624_v45, %v623_v44  ;;  %v817_v52 = vadd.f32 %v1866_v49, %v816_v46  ;;  %1213 = vmatmul.bf16.gmra.mxu3 %v1005_v39 }
 0x1fe   :  { %v1104_v48 = vpop.f32.mrf.mxu2 }
 0x1ff   :  { %v1105_v50 = vadd.f32 %v1918_v34, %v1104_v48  ;;  %855 = vmatmul.bf16.gmra.mxu1 %v667_v47  ;;  %v940_v57 = vmax.f32 %v817_v52, 0.0 }
 0x200   :  { %v528_v51 = vpop.f32.mrf.mxu0 }
 0x201   :  { %1255 = vst [vmem:[#allocation10 + $0x30] sm:$0xff] %v1105_v50  ;;  %v529_v58 = vadd.f32 %v1843_v26, %v528_v51 }
 0x203   :  { %v625_v1 = vmax.f32 %v529_v58, 0.0 }
 0x204   :  { %v818_v53 = vpop.f32.mrf.mxu1 }
 0x205   :  { %v819_v55 = vadd.f32 %v1866_v49, %v818_v53  ;;  %v887_v53 = vadd.f32 %v1866_v49, %v886_v42 }
 0x206   :  { %v1106_v56 = vpop.f32.mrf.mxu2 }
 0x207   :  { %v941_v59 = vmax.f32 %v819_v55, 0.0  ;;  %v1107_v60 = vadd.f32 %v1918_v34, %v1106_v56 }
 0x208   :  { %v530_v61 = vpop.f32.mrf.mxu0 }
 0x209   :  { %v992_v62 = vpack.c.bf16 %v941_v59, %v940_v57  ;;  %1256 = vst [vmem:[#allocation10 + $0x38] sm:$0xff] %v1107_v60  ;;  %v531_v63 = vadd.f32 %v1843_v26, %v530_v61  ;;  %v888_v57 = vpop.f32.mrf.mxu3  ;;  %v968_v59 = vmax.f32 %v887_v53, 0.0 }
 0x20a   :  { %v889_v60 = vadd.f32 %v1866_v49, %v888_v57 }
 0x20b   :  { %v626_v2 = vmax.f32 %v531_v63, 0.0  ;;  %1148 = vmatmul.bf16.gmra.mxu2 %v992_v62 }
 0x20c   :  { %v821_v3 = vpop.f32.mrf.mxu1  ;;  %v969_v63 = vmax.f32 %v889_v60, 0.0 }
 0x20d   :  { %v668_v5 = vpack.c.bf16 %v626_v2, %v625_v1  ;;  %v822_v13 = vadd.f32 %v1866_v49, %v821_v3 }
 0x20e   :  { %v1109_v8 = vpop.f32.mrf.mxu2  ;;  %v1006_v0 = vpack.c.bf16 %v969_v63, %v968_v59 }
 0x20f   :  { %v1110_v9 = vadd.f32 %v1918_v34, %v1109_v8  ;;  %860 = vmatmul.bf16.gmra.mxu1 %v668_v5  ;;  %v942_v18 = vmax.f32 %v822_v13, 0.0 }
 0x210   :  { %v533_v11 = vpop.f32.mrf.mxu0  ;;  %1218 = vmatmul.bf16.gmra.mxu3 %v1006_v0 }
 0x211   :  { %1257 = vst [vmem:[#allocation10 + $0x40] sm:$0xff] %v1110_v9  ;;  %v534_v19 = vadd.f32 %v1843_v26, %v533_v11  ;;  %v891_v2 = vpop.f32.mrf.mxu3 }
 0x212   :  { %v892_v9 = vadd.f32 %v1866_v49, %v891_v2 }
 0x213   :  { %v627_v27 = vmax.f32 %v534_v19, 0.0 }
 0x214   :  { %v823_v14 = vpop.f32.mrf.mxu1  ;;  %v970_v12 = vmax.f32 %v892_v9, 0.0 }
 0x215   :  { %v824_v16 = vadd.f32 %v1866_v49, %v823_v14 }
 0x216   :  { %v1111_v17 = vpop.f32.mrf.mxu2 }
 0x217   :  { %v943_v20 = vmax.f32 %v824_v16, 0.0  ;;  %v1112_v21 = vadd.f32 %v1918_v34, %v1111_v17 }
 0x218   :  { %v535_v22 = vpop.f32.mrf.mxu0 }
 0x219   :  { %v993_v23 = vpack.c.bf16 %v943_v20, %v942_v18  ;;  %1258 = vst [vmem:[#allocation10 + $0x48] sm:$0xff] %v1112_v21  ;;  %v536_v24 = vadd.f32 %v1843_v26, %v535_v22  ;;  %v893_v11 = vpop.f32.mrf.mxu3 }
 0x21a   :  { %v894_v13 = vadd.f32 %v1866_v49, %v893_v11 }
 0x21b   :  { %v628_v28 = vmax.f32 %v536_v24, 0.0  ;;  %1153 = vmatmul.bf16.gmra.mxu2 %v993_v23 }
 0x21c   :  { %v826_v29 = vpop.f32.mrf.mxu1  ;;  %v971_v16 = vmax.f32 %v894_v13, 0.0 }
 0x21d   :  { %v669_v31 = vpack.c.bf16 %v628_v28, %v627_v27  ;;  %v827_v40 = vadd.f32 %v1866_v49, %v826_v29 }
 0x21e   :  { %v1114_v35 = vpop.f32.mrf.mxu2  ;;  %v1007_v17 = vpack.c.bf16 %v971_v16, %v970_v12 }
 0x21f   :  { %v1115_v36 = vadd.f32 %v1918_v34, %v1114_v35  ;;  %865 = vmatmul.bf16.gmra.mxu1 %v669_v31  ;;  %v944_v45 = vmax.f32 %v827_v40, 0.0 }
 0x220   :  { %v538_v38 = vpop.f32.mrf.mxu0  ;;  %1223 = vmatmul.bf16.gmra.mxu3 %v1007_v17 }
 0x221   :  { %1259 = vst [vmem:[#allocation10 + $0x50] sm:$0xff] %v1115_v36  ;;  %v539_v46 = vadd.f32 %v1843_v26, %v538_v38  ;;  %v896_v20 = vpop.f32.mrf.mxu3 }
 0x222   :  { %v897_v28 = vadd.f32 %v1866_v49, %v896_v20 }
 0x223   :  { %v629_v54 = vmax.f32 %v539_v46, 0.0 }
 0x224   :  { %v828_v41 = vpop.f32.mrf.mxu1  ;;  %v972_v31 = vmax.f32 %v897_v28, 0.0 }
 0x225   :  { %v829_v43 = vadd.f32 %v1866_v49, %v828_v41 }
 0x226   :  { %v1116_v44 = vpop.f32.mrf.mxu2 }
 0x227   :  { %v945_v47 = vmax.f32 %v829_v43, 0.0  ;;  %v1117_v48 = vadd.f32 %v1918_v34, %v1116_v44 }
 0x228   :  { %v540_v50 = vpop.f32.mrf.mxu0 }
 0x229   :  { %v994_v51 = vpack.c.bf16 %v945_v47, %v944_v45  ;;  %1260 = vst [vmem:[#allocation10 + $0x58] sm:$0xff] %v1117_v48  ;;  %v541_v52 = vadd.f32 %v1843_v26, %v540_v50  ;;  %v898_v30 = vpop.f32.mrf.mxu3 }
 0x22a   :  { %v899_v32 = vadd.f32 %v1866_v49, %v898_v30 }
 0x22b   :  { %v630_v55 = vmax.f32 %v541_v52, 0.0  ;;  %1158 = vmatmul.bf16.gmra.mxu2 %v994_v51 }
 0x22c   :  { %v831_v56 = vpop.f32.mrf.mxu1  ;;  %v973_v36 = vmax.f32 %v899_v32, 0.0 }
 0x22d   :  { %v670_v58 = vpack.c.bf16 %v630_v55, %v629_v54  ;;  %v832_v26 = vadd.f32 %v1866_v49, %v831_v56 }
 0x22e   :  { %v1119_v61 = vpop.f32.mrf.mxu2  ;;  %v1008_v37 = vpack.c.bf16 %v973_v36, %v972_v31 }
 0x22f   :  { %v1120_v62 = vadd.f32 %v1918_v34, %v1119_v61  ;;  %870 = vmatmul.bf16.gmra.mxu1 %v670_v58  ;;  %v946_v5 = vmax.f32 %v832_v26, 0.0 }
 0x230   :  { %1228 = vmatmul.bf16.gmra.mxu3 %v1008_v37 }
 0x231   :  { %1261 = vst [vmem:[#allocation10 + $0x60] sm:$0xff] %v1120_v62  ;;  %v901_v40 = vpop.f32.mrf.mxu3 }
 0x232   :  { %v902_v47 = vadd.f32 %v1866_v49, %v901_v40 }
 0x234   :  { %v833_v1 = vpop.f32.mrf.mxu1  ;;  %v974_v51 = vmax.f32 %v902_v47, 0.0 }
 0x235   :  { %v834_v3 = vadd.f32 %v1866_v49, %v833_v1 }
 0x236   :  { %v1121_v4 = vpop.f32.mrf.mxu2 }
 0x237   :  { %v947_v6 = vmax.f32 %v834_v3, 0.0  ;;  %v1122_v7 = vadd.f32 %v1918_v34, %v1121_v4 }
 0x239   :  { %v995_v8 = vpack.c.bf16 %v947_v6, %v946_v5  ;;  %1262 = vst [vmem:[#allocation10 + $0x68] sm:$0xff] %v1122_v7  ;;  %v903_v50 = vpop.f32.mrf.mxu3 }
 0x23a   :  { %v904_v52 = vadd.f32 %v1866_v49, %v903_v50 }
 0x23b   :  { %1163 = vmatmul.bf16.gmra.mxu2 %v995_v8 }
 0x23c   :  { %v836_v10 = vpop.f32.mrf.mxu1  ;;  %v975_v55 = vmax.f32 %v904_v52, 0.0 }
 0x23d   :  { %v837_v18 = vadd.f32 %v1866_v49, %v836_v10 }
 0x23e   :  { %v1124_v14 = vpop.f32.mrf.mxu2  ;;  %v1009_v56 = vpack.c.bf16 %v975_v55, %v974_v51 }
 0x23f   :  { %v1125_v15 = vadd.f32 %v1918_v34, %v1124_v14  ;;  %v948_v23 = vmax.f32 %v837_v18, 0.0 }
 0x240   :  { %1233 = vmatmul.bf16.gmra.mxu3 %v1009_v56 }
 0x241   :  { %1263 = vst [vmem:[#allocation10 + $0x70] sm:$0xff] %v1125_v15  ;;  %v906_v59 = vpop.f32.mrf.mxu3 }
 0x242   :  { %v907_v1 = vadd.f32 %v1866_v49, %v906_v59 }
 0x244   :  { %v838_v19 = vpop.f32.mrf.mxu1  ;;  %v976_v4 = vmax.f32 %v907_v1, 0.0 }
 0x245   :  { %v839_v21 = vadd.f32 %v1866_v49, %v838_v19 }
 0x246   :  { %v1126_v22 = vpop.f32.mrf.mxu2 }
 0x247   :  { %v949_v24 = vmax.f32 %v839_v21, 0.0  ;;  %v1127_v25 = vadd.f32 %v1918_v34, %v1126_v22 }
 0x249   :  { %v996_v27 = vpack.c.bf16 %v949_v24, %v948_v23  ;;  %1264 = vst [vmem:[#allocation10 + $0x78] sm:$0xff] %v1127_v25  ;;  %v908_v3 = vpop.f32.mrf.mxu3 }
 0x24a   :  { %v909_v5 = vadd.f32 %v1866_v49, %v908_v3 }
 0x24b   :  { %1168 = vmatmul.bf16.gmra.mxu2 %v996_v27 }
 0x24c   :  { %v841_v29 = vpop.f32.mrf.mxu1  ;;  %v977_v8 = vmax.f32 %v909_v5, 0.0 }
 0x24d   :  { %v842_v38 = vadd.f32 %v1866_v49, %v841_v29 }
 0x24e   :  { %v1129_v33 = vpop.f32.mrf.mxu2  ;;  %v1010_v9 = vpack.c.bf16 %v977_v8, %v976_v4 }
 0x24f   :  { %v1130_v35 = vadd.f32 %v1918_v34, %v1129_v33  ;;  %v950_v43 = vmax.f32 %v842_v38, 0.0 }
 0x250   :  { %1238 = vmatmul.bf16.gmra.mxu3 %v1010_v9 }
 0x251   :  { %1265 = vst [vmem:[#allocation10 + $0x80] sm:$0xff] %v1130_v35 }
 0x252   :  { %v911_v12 = vpop.f32.mrf.mxu3 }
 0x253   :  { %v912_v19 = vadd.f32 %v1866_v49, %v911_v12 }
 0x254   :  { %v843_v39 = vpop.f32.mrf.mxu1 }
 0x255   :  { %v844_v41 = vadd.f32 %v1866_v49, %v843_v39  ;;  %v978_v22 = vmax.f32 %v912_v19, 0.0 }
 0x256   :  { %v1131_v42 = vpop.f32.mrf.mxu2 }
 0x257   :  { %v951_v44 = vmax.f32 %v844_v41, 0.0  ;;  %v1132_v45 = vadd.f32 %v1918_v34, %v1131_v42  ;;  %v1650_v41 = vld [vmem:[%s2051_s4] ss:$0 sm:$0xff]  ;;  %s1785_s4 = smov [#allocation10]  }
 0x258   :  { %s1317_s25 = sshll.u32 %s1785_s4, 4  ;;  %s1318_s25 = int_to_ptr.vmem [resolvable:$true] %s1317_s25 }
 0x259   :  { %v997_v46 = vpack.c.bf16 %v951_v44, %v950_v43  ;;  %1266 = vst [vmem:[#allocation10 + $0x88] sm:$0xff] %v1132_v45 }
 0x25a   :  { %v913_v21 = vpop.f32.mrf.mxu3 }
 0x25b   :  { %1173 = vmatmul.bf16.gmra.mxu2 %v997_v46  ;;  %v914_v23 = vadd.f32 %v1866_v49, %v913_v21 }
 0x25c   :  { %v846_v48 = vpop.f32.mrf.mxu1 }
 0x25d   :  { %v847_v57 = vadd.f32 %v1866_v49, %v846_v48  ;;  %v979_v27 = vmax.f32 %v914_v23, 0.0 }
 0x25e   :  { %v1134_v53 = vpop.f32.mrf.mxu2 }
 0x25f   :  { %v1135_v54 = vadd.f32 %v1918_v34, %v1134_v53  ;;  %v952_v62 = vmax.f32 %v847_v57, 0.0  ;;  %v1011_v28 = vpack.c.bf16 %v979_v27, %v978_v22 }
 0x261   :  { %1267 = vst [vmem:[#allocation10 + $0x90] sm:$0xff] %v1135_v54  ;;  %1243 = vmatmul.bf16.gmra.mxu3 %v1011_v28 }
 0x264   :  { %v848_v58 = vpop.f32.mrf.mxu1 }
 0x265   :  { %v849_v60 = vadd.f32 %v1866_v49, %v848_v58 }
 0x266   :  { %v1136_v61 = vpop.f32.mrf.mxu2 }
 0x267   :  { %v953_v63 = vmax.f32 %v849_v60, 0.0  ;;  %v1137_v0 = vadd.f32 %v1918_v34, %v1136_v61 }
 0x269   :  { %v998_v26 = vpack.c.bf16 %v953_v63, %v952_v62  ;;  %1268 = vst [vmem:[#allocation10 + $0x98] sm:$0xff] %v1137_v0 }
 0x26b   :  { %1178 = vmatmul.bf16.gmra.mxu2 %v998_v26 }
 0x26c   :  { %v851_v2 = vpop.f32.mrf.mxu1 }
 0x26d   :  { %v852_v10 = vadd.f32 %v1866_v49, %v851_v2 }
 0x26e   :  { %v1139_v6 = vpop.f32.mrf.mxu2 }
 0x26f   :  { %v1140_v7 = vadd.f32 %v1918_v34, %v1139_v6  ;;  %v954_v15 = vmax.f32 %v852_v10, 0.0 }
 0x270   :  { %v1209_v45 = vpop.f32.mrf.mxu3 }
 0x271   :  { %1269 = vst [vmem:[#allocation10 + $0xa0] sm:$0xff] %v1140_v7  ;;  %v1210_v51 = vadd.f32 %v1918_v34, %v1209_v45 }
 0x273   :  { %1297 = vst [vmem:[#allocation10 + $0x180] sm:$0xff] %v1210_v51 }
 0x274   :  { %v853_v11 = vpop.f32.mrf.mxu1 }
 0x275   :  { %v854_v13 = vadd.f32 %v1866_v49, %v853_v11 }
 0x276   :  { %v1141_v14 = vpop.f32.mrf.mxu2 }
 0x277   :  { %v955_v16 = vmax.f32 %v854_v13, 0.0  ;;  %v1142_v17 = vadd.f32 %v1918_v34, %v1141_v14 }
 0x278   :  { %v1211_v54 = vpop.f32.mrf.mxu3 }
 0x279   :  { %v999_v18 = vpack.c.bf16 %v955_v16, %v954_v15  ;;  %1270 = vst [vmem:[#allocation10 + $0xa8] sm:$0xff] %v1142_v17  ;;  %v1212_v56 = vadd.f32 %v1918_v34, %v1211_v54 }
 0x27b   :  { %1183 = vmatmul.bf16.gmra.mxu2 %v999_v18  ;;  %1298 = vst [vmem:[#allocation10 + $0x188] sm:$0xff] %v1212_v56 }
 0x27c   :  { %v856_v20 = vpop.f32.mrf.mxu1 }
 0x27d   :  { %v857_v29 = vadd.f32 %v1866_v49, %v856_v20 }
 0x27e   :  { %v1144_v24 = vpop.f32.mrf.mxu2 }
 0x27f   :  { %v1145_v25 = vadd.f32 %v1918_v34, %v1144_v24  ;;  %v956_v33 = vmax.f32 %v857_v29, 0.0 }
 0x280   :  { %v1214_v61 = vpop.f32.mrf.mxu3 }
 0x281   :  { %1271 = vst [vmem:[#allocation10 + $0xb0] sm:$0xff] %v1145_v25  ;;  %v1215_v1 = vadd.f32 %v1918_v34, %v1214_v61 }
 0x283   :  { %1299 = vst [vmem:[#allocation10 + $0x190] sm:$0xff] %v1215_v1 }
 0x284   :  { %v858_v30 = vpop.f32.mrf.mxu1 }
 0x285   :  { %v859_v31 = vadd.f32 %v1866_v49, %v858_v30 }
 0x286   :  { %v1146_v32 = vpop.f32.mrf.mxu2 }
 0x287   :  { %v957_v35 = vmax.f32 %v859_v31, 0.0  ;;  %v1147_v36 = vadd.f32 %v1918_v34, %v1146_v32 }
 0x288   :  { %v1216_v4 = vpop.f32.mrf.mxu3 }
 0x289   :  { %v1000_v37 = vpack.c.bf16 %v957_v35, %v956_v33  ;;  %1272 = vst [vmem:[#allocation10 + $0xb8] sm:$0xff] %v1147_v36  ;;  %v1217_v6 = vadd.f32 %v1918_v34, %v1216_v4 }
 0x28b   :  { %1188 = vmatmul.bf16.gmra.mxu2 %v1000_v37  ;;  %1300 = vst [vmem:[#allocation10 + $0x198] sm:$0xff] %v1217_v6 }
 0x28c   :  { %v861_v38 = vpop.f32.mrf.mxu1 }
 0x28d   :  { %v862_v42 = vadd.f32 %v1650_v41, %v861_v38 }
 0x28e   :  { %v1149_v39 = vpop.f32.mrf.mxu2 }
 0x28f   :  { %v1150_v40 = vadd.f32 %v1918_v34, %v1149_v39  ;;  %v958_v46 = vmax.f32 %v862_v42, 0.0 }
 0x291   :  { %1273 = vst [vmem:[#allocation10 + $0xc0] sm:$0xff] %v1150_v40 }
 0x293   :  { %v1219_v11 = vpop.f32.mrf.mxu3 }
 0x294   :  { %v863_v43 = vpop.f32.mrf.mxu1  ;;  %v1220_v16 = vadd.f32 %v1918_v34, %v1219_v11 }
 0x295   :  { %v864_v49 = vadd.f32 %v1650_v41, %v863_v43 }
 0x296   :  { %v1151_v44 = vpop.f32.mrf.mxu2  ;;  %1301 = vst [vmem:[#allocation10 + $0x1a0] sm:$0xff] %v1220_v16 }
 0x297   :  { %v959_v47 = vmax.f32 %v864_v49, 0.0  ;;  %v1152_v48 = vadd.f32 %v1918_v34, %v1151_v44 }
 0x299   :  { %v1001_v50 = vpack.c.bf16 %v959_v47, %v958_v46  ;;  %1274 = vst [vmem:[#allocation10 + $0xc8] sm:$0xff] %v1152_v48 }
 0x29b   :  { %1193 = vmatmul.bf16.gmra.mxu2 %v1001_v50  ;;  %v1221_v18 = vpop.f32.mrf.mxu3 }
 0x29c   :  { %v866_v52 = vpop.f32.mrf.mxu1  ;;  %v1222_v20 = vadd.f32 %v1918_v34, %v1221_v18 }
 0x29d   :  { %v867_v57 = vadd.f32 %v1650_v41, %v866_v52 }
 0x29e   :  { %v1154_v53 = vpop.f32.mrf.mxu2  ;;  %1302 = vst [vmem:[#allocation10 + $0x1a8] sm:$0xff] %v1222_v20 }
 0x29f   :  { %v1155_v55 = vadd.f32 %v1918_v34, %v1154_v53  ;;  %v960_v62 = vmax.f32 %v867_v57, 0.0 }
 0x2a1   :  { %1275 = vst [vmem:[#allocation10 + $0xd0] sm:$0xff] %v1155_v55 }
 0x2a3   :  { %v1224_v22 = vpop.f32.mrf.mxu3 }
 0x2a4   :  { %v868_v58 = vpop.f32.mrf.mxu1  ;;  %v1225_v24 = vadd.f32 %v1918_v34, %v1224_v22 }
 0x2a5   :  { %v869_v59 = vadd.f32 %v1650_v41, %v868_v58 }
 0x2a6   :  { %v1156_v60 = vpop.f32.mrf.mxu2  ;;  %1303 = vst [vmem:[#allocation10 + $0x1b0] sm:$0xff] %v1225_v24 }
 0x2a7   :  { %v961_v63 = vmax.f32 %v869_v59, 0.0  ;;  %v1157_v0 = vadd.f32 %v1918_v34, %v1156_v60 }
 0x2a9   :  { %v1002_v26 = vpack.c.bf16 %v961_v63, %v960_v62  ;;  %1276 = vst [vmem:[#allocation10 + $0xd8] sm:$0xff] %v1157_v0 }
 0x2ab   :  { %1198 = vmatmul.bf16.gmra.mxu2 %v1002_v26  ;;  %v1226_v27 = vpop.f32.mrf.mxu3 }
 0x2ac   :  { %v871_v2 = vpop.f32.mrf.mxu1  ;;  %v1227_v29 = vadd.f32 %v1918_v34, %v1226_v27 }
 0x2ad   :  { %v872_v7 = vadd.f32 %v1650_v41, %v871_v2 }
 0x2ae   :  { %v1159_v3 = vpop.f32.mrf.mxu2  ;;  %1304 = vst [vmem:[#allocation10 + $0x1b8] sm:$0xff] %v1227_v29 }
 0x2af   :  { %v1160_v5 = vadd.f32 %v1918_v34, %v1159_v3  ;;  %v962_v12 = vmax.f32 %v872_v7, 0.0 }
 0x2b1   :  { %1277 = vst [vmem:[#allocation10 + $0xe0] sm:$0xff] %v1160_v5 }
 0x2b3   :  { %v1229_v31 = vpop.f32.mrf.mxu3 }
 0x2b4   :  { %v873_v8 = vpop.f32.mrf.mxu1  ;;  %v1230_v33 = vadd.f32 %v1918_v34, %v1229_v31 }
 0x2b5   :  { %v874_v9 = vadd.f32 %v1650_v41, %v873_v8 }
 0x2b6   :  { %v1161_v10 = vpop.f32.mrf.mxu2  ;;  %1305 = vst [vmem:[#allocation10 + $0x1c0] sm:$0xff] %v1230_v33 }
 0x2b7   :  { %v963_v13 = vmax.f32 %v874_v9, 0.0  ;;  %v1162_v14 = vadd.f32 %v1918_v34, %v1161_v10 }
 0x2b9   :  { %v1003_v15 = vpack.c.bf16 %v963_v13, %v962_v12  ;;  %1278 = vst [vmem:[#allocation10 + $0xe8] sm:$0xff] %v1162_v14 }
 0x2bb   :  { %1203 = vmatmul.bf16.gmra.mxu2 %v1003_v15  ;;  %v1231_v36 = vpop.f32.mrf.mxu3 }
 0x2bc   :  { %v1232_v38 = vadd.f32 %v1918_v34, %v1231_v36 }
 0x2be   :  { %v1164_v17 = vpop.f32.mrf.mxu2  ;;  %1306 = vst [vmem:[#allocation10 + $0x1c8] sm:$0xff] %v1232_v38 }
 0x2bf   :  { %v1165_v19 = vadd.f32 %v1918_v34, %v1164_v17 }
 0x2c1   :  { %1279 = vst [vmem:[#allocation10 + $0xf0] sm:$0xff] %v1165_v19 }
 0x2c3   :  { %v1234_v40 = vpop.f32.mrf.mxu3 }
 0x2c4   :  { %v1235_v42 = vadd.f32 %v1918_v34, %v1234_v40 }
 0x2c6   :  { %v1166_v21 = vpop.f32.mrf.mxu2  ;;  %1307 = vst [vmem:[#allocation10 + $0x1d0] sm:$0xff] %v1235_v42 }
 0x2c7   :  { %v1167_v23 = vadd.f32 %v1918_v34, %v1166_v21 }
 0x2c9   :  { %1280 = vst [vmem:[#allocation10 + $0xf8] sm:$0xff] %v1167_v23 }
 0x2cb   :  { %v1236_v49 = vpop.f32.mrf.mxu3 }
 0x2cc   :  { %v1237_v45 = vadd.f32 %v1918_v34, %v1236_v49 }
 0x2ce   :  { %v1169_v25 = vpop.f32.mrf.mxu2  ;;  %1308 = vst [vmem:[#allocation10 + $0x1d8] sm:$0xff] %v1237_v45 }
 0x2cf   :  { %v1170_v28 = vadd.f32 %v1918_v34, %v1169_v25 }
 0x2d1   :  { %1281 = vst [vmem:[#allocation10 + $0x100] sm:$0xff] %v1170_v28 }
 0x2d3   :  { %v1239_v47 = vpop.f32.mrf.mxu3 }
 0x2d4   :  { %v1240_v50 = vadd.f32 %v1918_v34, %v1239_v47 }
 0x2d6   :  { %v1171_v30 = vpop.f32.mrf.mxu2  ;;  %1309 = vst [vmem:[#allocation10 + $0x1e0] sm:$0xff] %v1240_v50 }
 0x2d7   :  { %v1172_v32 = vadd.f32 %v1918_v34, %v1171_v30 }
 0x2d9   :  { %1282 = vst [vmem:[#allocation10 + $0x108] sm:$0xff] %v1172_v32 }
 0x2db   :  { %v1241_v52 = vpop.f32.mrf.mxu3 }
 0x2dc   :  { %v1242_v54 = vadd.f32 %v1918_v34, %v1241_v52 }
 0x2de   :  { %v1174_v35 = vpop.f32.mrf.mxu2  ;;  %1310 = vst [vmem:[#allocation10 + $0x1e8] sm:$0xff] %v1242_v54 }
 0x2df   :  { %v1175_v37 = vadd.f32 %v1918_v34, %v1174_v35 }
 0x2e1   :  { %1283 = vst [vmem:[#allocation10 + $0x110] sm:$0xff] %v1175_v37 }
 0x2e4   :  { %v1244_v56 = vpop.f32.mrf.mxu3 }
 0x2e5   :  { %v1245_v58 = vadd.f32 %v1918_v34, %v1244_v56 }
 0x2e6   :  { %v1176_v39 = vpop.f32.mrf.mxu2 }
 0x2e7   :  { %v1177_v41 = vadd.f32 %v1918_v34, %v1176_v39  ;;  %1311 = vst [vmem:[#allocation10 + $0x1f0] sm:$0xff] %v1245_v58 }
 0x2e9   :  { %1284 = vst [vmem:[#allocation10 + $0x118] sm:$0xff] %v1177_v41 }
 0x2ec   :  { %v1246_v60 = vpop.f32.mrf.mxu3 }
 0x2ed   :  { %v1247_v62 = vadd.f32 %v1918_v34, %v1246_v60 }
 0x2ee   :  { %v1179_v43 = vpop.f32.mrf.mxu2 }
 0x2ef   :  { %v1180_v44 = vadd.f32 %v1918_v34, %v1179_v43  ;;  %1312 = vst [vmem:[#allocation10 + $0x1f8] sm:$0xff] %v1247_v62 }
 0x2f1   :  { %1285 = vst [vmem:[#allocation10 + $0x120] sm:$0xff] %v1180_v44 }
 0x2f6   :  { %v1181_v46 = vpop.f32.mrf.mxu2 }
 0x2f7   :  { %v1182_v48 = vadd.f32 %v1918_v34, %v1181_v46 }
 0x2f9   :  { %1286 = vst [vmem:[#allocation10 + $0x128] sm:$0xff] %v1182_v48 }
 0x2fe   :  { %v1184_v51 = vpop.f32.mrf.mxu2 }
 0x2ff   :  { %v1185_v53 = vadd.f32 %v1918_v34, %v1184_v51 }
 0x301   :  { %1287 = vst [vmem:[#allocation10 + $0x130] sm:$0xff] %v1185_v53 }
 0x306   :  { %v1186_v55 = vpop.f32.mrf.mxu2 }
 0x307   :  { %v1187_v57 = vadd.f32 %v1918_v34, %v1186_v55 }
 0x309   :  { %1288 = vst [vmem:[#allocation10 + $0x138] sm:$0xff] %v1187_v57 }
 0x30e   :  { %v1189_v59 = vpop.f32.mrf.mxu2 }
 0x30f   :  { %v1190_v61 = vadd.f32 %v1918_v34, %v1189_v59 }
 0x311   :  { %1289 = vst [vmem:[#allocation10 + $0x140] sm:$0xff] %v1190_v61 }
 0x316   :  { %v1191_v63 = vpop.f32.mrf.mxu2 }
 0x317   :  { %v1192_v0 = vadd.f32 %v1918_v34, %v1191_v63 }
 0x319   :  { %1290 = vst [vmem:[#allocation10 + $0x148] sm:$0xff] %v1192_v0 }
 0x31e   :  { %v1194_v26 = vpop.f32.mrf.mxu2 }
 0x31f   :  { %v1195_v1 = vadd.f32 %v1918_v34, %v1194_v26 }
 0x321   :  { %1291 = vst [vmem:[#allocation10 + $0x150] sm:$0xff] %v1195_v1 }
 0x326   :  { %v1196_v2 = vpop.f32.mrf.mxu2 }
 0x327   :  { %v1197_v3 = vadd.f32 %v1918_v34, %v1196_v2 }
 0x329   :  { %1292 = vst [vmem:[#allocation10 + $0x158] sm:$0xff] %v1197_v3 }
 0x32e   :  { %v1199_v4 = vpop.f32.mrf.mxu2 }
 0x32f   :  { %v1200_v5 = vadd.f32 %v1918_v34, %v1199_v4 }
 0x331   :  { %1293 = vst [vmem:[#allocation10 + $0x160] sm:$0xff] %v1200_v5 }
 0x336   :  { %v1201_v6 = vpop.f32.mrf.mxu2 }
 0x337   :  { %v1202_v7 = vadd.f32 %v1918_v34, %v1201_v6 }
 0x339   :  { %1294 = vst [vmem:[#allocation10 + $0x168] sm:$0xff] %v1202_v7 }
 0x33e   :  { %v1204_v8 = vpop.f32.mrf.mxu2 }
 0x33f   :  { %v1205_v9 = vadd.f32 %v1918_v34, %v1204_v8 }
 0x341   :  { %1295 = vst [vmem:[#allocation10 + $0x170] sm:$0xff] %v1205_v9 }
 0x346   :  { %v1206_v10 = vpop.f32.mrf.mxu2 }
 0x347   :  { %v1207_v11 = vadd.f32 %v1918_v34, %v1206_v10 }
 0x349   :  { %1296 = vst [vmem:[#allocation10 + $0x178] sm:$0xff] %v1207_v11 }
 0x34a   :  { %1325 = dma.vmem_to_hbm [thread:$0]  %s1318_s25, 8192, %s1320_s28, [#allocation4], %s1786_s29, %s1786_s29, %s1787_s30  }
 0x34b   :  { %1777 = dma.done.wait [#allocation4], 8192  }
 0x34c   :  { %1778 = vsyncadd [#allocation4], 4294959104 }
 0x34d   :  { %1330 = vsyncpa [#allocation3], 1 }
 0x34e   :  { %1331 = vsyncpa [#allocation6], 1 }
 0x34f   :  { %1332 = vsyncpa [#allocation9], 1 }
 0x350   :  { %1333 = vsyncpa [#allocation4], 1 }

// kernel: tpu_custom_call.1
= control target key start
LH: loop header
LB: loop body
LE: loop exit
PB: predicated region body
PF: predicated region fallthrough
CT: control target
= control target key end

     0   :  { %12 = vsyncpa [#allocation3], 0  ;;  %s2047_s0 = inlined_call_operand.hbm [shape: bf16[512,128], index: 0, kind: input, shape index: {}]   ;;  %s2048_s1 = inlined_call_operand.hbm [shape: bf16[128,128], index: 1, kind: input, shape index: {}]   ;;  %s2049_s2 = inlined_call_operand.vmem [shape: f32[1,128], index: 2, kind: input, shape index: {}]   ;;  %s2050_s3 = inlined_call_operand.hbm [shape: bf16[128,128], index: 3, kind: input, shape index: {}]   ;;  %s2051_s4 = inlined_call_operand.vmem [shape: f32[1,128], index: 4, kind: input, shape index: {}]   ;;  %s2052_s5 = inlined_call_operand.hbm [shape: bf16[128,128], index: 5, kind: input, shape index: {}]   ;;  %s2053_s6 = inlined_call_operand.vmem [shape: f32[1,128], index: 6, kind: input, shape index: {}]   ;;  %s2054_s7 = inlined_call_operand.hbm [shape: f32[512,128], index: 7, kind: output, shape index: {}]  }
   0x1   :  { %13 = vsyncpa [#allocation6], 0 }
   0x2   :  { %14 = vsyncpa [#allocation9], 0 }
   0x3   :  { %15 = vsyncpa [#allocation4], 0  ;;  %s33_s26 = sshll.u32 %s2048_s1, 4  ;;  %s1779_s27 = smov [#allocation5]   ;;  %s34_s26 = int_to_ptr.hbm [resolvable:$true] %s33_s26 }
   0x4   :  { %s35_s28 = sshll.u32 %s1779_s27, 4  ;;  %s20_s8 = sshll.u32 %s2047_s0, 4  ;;  %s36_s28 = int_to_ptr.vmem [resolvable:$true] %s35_s28  ;;  %s21_s8 = int_to_ptr.hbm [resolvable:$true] %s20_s8 }
   0x5   :  { %s1780_s9 = smov 64   ;;  %s1781_s10 = smov 4  }
   0x6   :  { %41 = dma.hbm_to_vmem [thread:$0]  %s34_s26, 1024, %s36_s28, [#allocation6], %s1780_s9, %s1780_s9, %s1781_s10  }
   0x7   :  { %s1782_s11 = smov [#allocation2]   ;;  %s48_s15 = sshll.u32 %s2050_s3, 4  ;;  %s49_s15 = int_to_ptr.hbm [resolvable:$true] %s48_s15 }
   0x8   :  { %s22_s12 = sshll.u32 %s1782_s11, 4  ;;  %s63_s17 = sshll.u32 %s2052_s5, 4  ;;  %s23_s12 = int_to_ptr.vmem [resolvable:$true] %s22_s12  ;;  %s64_s17 = int_to_ptr.hbm [resolvable:$true] %s63_s17 }
   0x9   :  { %28 = dma.hbm_to_vmem [thread:$0]  %s21_s8, 4096, %s23_s12, [#allocation3], %s1780_s9, %s1780_s9, %s1781_s10  }
   0xa   :  { %s1783_s18 = smov [#allocation7]   ;;  %s1784_s0 = smov [#allocation8]  }
   0xb   :  { %s50_s19 = sshll.u32 %s1783_s18, 4  ;;  %s65_s20 = sshll.u32 %s1784_s0, 4  ;;  %s51_s19 = int_to_ptr.vmem [resolvable:$true] %s50_s19  ;;  %s66_s20 = int_to_ptr.vmem [resolvable:$true] %s65_s20 }
   0xc   :  { %56 = dma.hbm_to_vmem [thread:$0]  %s49_s15, 1024, %s51_s19, [#allocation6], %s1780_s9, %s1780_s9, %s1781_s10  }
   0xd   :  { %71 = dma.hbm_to_vmem [thread:$0]  %s64_s17, 1024, %s66_s20, [#allocation9], %s1780_s9, %s1780_s9, %s1781_s10  }
   0xe   :  { %1771 = dma.done.wait [#allocation3], 4096  }
   0xf   :  { %1772 = vsyncadd [#allocation3], 4294963200 }
  0x10   :  { %1773 = dma.done.wait [#allocation6], 2048  }
  0x11   :  { %1774 = vsyncadd [#allocation6], 4294965248 }
  0x12   :  { %1775 = dma.done.wait [#allocation9], 1024  }
  0x13   :  { %1776 = vsyncadd [#allocation9], 4294966272  ;;  %v1597_v0 = vld [vmem:[#allocation5 + $0x38] sm:$0xff]  ;;  %v1596_v1 = vld [vmem:[#allocation5 + $0x30] sm:$0xff]  ;;  %s1319_s28 = sshll.u32 %s2054_s7, 4  ;;  %s1786_s29 = smov 128   ;;  %s1320_s28 = int_to_ptr.hbm [resolvable:$true] %s1319_s28 }
  0x14   :  { %414 = vmatpush.bf16.msra.mxu0 %v1597_v0  ;;  %1614 = vmatpush.bf16.msra.mxu3 %v1597_v0  ;;  %v1595_v2 = vld [vmem:[#allocation5 + $0x28] sm:$0xff]  ;;  %v1594_v3 = vld [vmem:[#allocation5 + $0x20] sm:$0xff]  ;;  %v1593_v4 = vld [vmem:[#allocation5 + $0x18] sm:$0xff]  ;;  %s1787_s30 = smov 8  }
  0x15   :  { %v1592_v5 = vld [vmem:[#allocation5 + $0x10] sm:$0xff]  ;;  %v1591_v6 = vld [vmem:[#allocation5 + $0x8] sm:$0xff]  ;;  %v1590_v7 = vld [vmem:[#allocation5] sm:$0xff] }
  0x16   :  { %v1558_v8 = vld [vmem:[#allocation2] sm:$0xff]  ;;  %v1559_v9 = vld [vmem:[#allocation2 + $0x8] sm:$0xff]  ;;  %v1560_v10 = vld [vmem:[#allocation2 + $0x10] sm:$0xff] }
  0x17   :  { %v1561_v11 = vld [vmem:[#allocation2 + $0x18] sm:$0xff]  ;;  %v1562_v12 = vld [vmem:[#allocation2 + $0x20] sm:$0xff]  ;;  %v1563_v14 = vld [vmem:[#allocation2 + $0x28] sm:$0xff] }
  0x18   :  { %415 = vmatpush.bf16.msra.mxu0 %v1596_v1  ;;  %1615 = vmatpush.bf16.msra.mxu3 %v1596_v1  ;;  %v1605_v13 = vld [vmem:[#allocation7 + $0x38] sm:$0xff]  ;;  %v1604_v15 = vld [vmem:[#allocation7 + $0x30] sm:$0xff]  ;;  %v1603_v16 = vld [vmem:[#allocation7 + $0x28] sm:$0xff] }
  0x19   :  { %747 = vmatpush.bf16.msra.mxu1 %v1605_v13  ;;  %v1602_v17 = vld [vmem:[#allocation7 + $0x20] sm:$0xff]  ;;  %v1601_v18 = vld [vmem:[#allocation7 + $0x18] sm:$0xff]  ;;  %v1564_v19 = vld [vmem:[#allocation2 + $0x30] sm:$0xff] }
  0x1a   :  { %v1600_v20 = vld [vmem:[#allocation7 + $0x10] sm:$0xff]  ;;  %v1599_v21 = vld [vmem:[#allocation7 + $0x8] sm:$0xff]  ;;  %v1598_v22 = vld [vmem:[#allocation7] sm:$0xff] }
  0x1b   :  { %v1565_v23 = vld [vmem:[#allocation2 + $0x38] sm:$0xff]  ;;  %v1566_v24 = vld [vmem:[#allocation2 + $0x40] sm:$0xff]  ;;  %v1567_v33 = vld [vmem:[#allocation2 + $0x48] sm:$0xff] }
  0x1c   :  { %416 = vmatpush.bf16.msra.mxu0 %v1595_v2  ;;  %1616 = vmatpush.bf16.msra.mxu3 %v1595_v2  ;;  %v1843_v26 = vld [vmem:[%s2049_s2] ss:$0 sm:$0xff]  ;;  %v1568_v41 = vld [vmem:[#allocation2 + $0x50] sm:$0xff]  ;;  %v1569_v49 = vld [vmem:[#allocation2 + $0x58] sm:$0xff] }
  0x1d   :  { %748 = vmatpush.bf16.msra.mxu1 %v1604_v15  ;;  %v1582_v56 = vld [vmem:[#allocation2 + $0xc0] sm:$0xff]  ;;  %v1583_v1 = vld [vmem:[#allocation2 + $0xc8] sm:$0xff] }
  0x1e   :  { %v1570_v58 = vld [vmem:[#allocation2 + $0x60] sm:$0xff] }
  0x20   :  { %417 = vmatpush.bf16.msra.mxu0 %v1594_v3  ;;  %1617 = vmatpush.bf16.msra.mxu3 %v1594_v3  ;;  %v1571_v3 = vld [vmem:[#allocation2 + $0x68] sm:$0xff] }
  0x21   :  { %749 = vmatpush.bf16.msra.mxu1 %v1603_v16 }
  0x24   :  { %418 = vmatpush.bf16.msra.mxu0 %v1593_v4  ;;  %1618 = vmatpush.bf16.msra.mxu3 %v1593_v4 }
  0x25   :  { %750 = vmatpush.bf16.msra.mxu1 %v1602_v17 }
  0x28   :  { %419 = vmatpush.bf16.msra.mxu0 %v1592_v5  ;;  %1619 = vmatpush.bf16.msra.mxu3 %v1592_v5 }
  0x29   :  { %751 = vmatpush.bf16.msra.mxu1 %v1601_v18 }
  0x2c   :  { %420 = vmatpush.bf16.msra.mxu0 %v1591_v6  ;;  %1620 = vmatpush.bf16.msra.mxu3 %v1591_v6 }
  0x2d   :  { %752 = vmatpush.bf16.msra.mxu1 %v1600_v20 }
  0x30   :  { %421 = vmatpush.bf16.msra.mxu0 %v1590_v7  ;;  %1621 = vmatpush.bf16.msra.mxu3 %v1590_v7 }
  0x31   :  { %753 = vmatpush.bf16.msra.mxu1 %v1599_v21 }
  0x33   :  { %422 = vmatmul.bf16.vlgmr.msra.gmra.mxu0 %v1558_v8  ;;  %542 = vmatmul.bf16.vlgmr.msra.gmra.mxu3 %v1582_v56  ;;  %v1613_v8 = vld [vmem:[#allocation8 + $0x38] sm:$0xff] }
  0x34   :  { %1622 = vmatpush.bf16.msrb.mxu3 %v1605_v13  ;;  %1080 = vmatpush.bf16.msra.mxu2 %v1613_v8  ;;  %v1612_v13 = vld [vmem:[#allocation8 + $0x30] sm:$0xff] }
  0x35   :  { %754 = vmatpush.bf16.msra.mxu1 %v1598_v22 }
  0x38   :  { %1623 = vmatpush.bf16.msrb.mxu3 %v1604_v15  ;;  %1081 = vmatpush.bf16.msra.mxu2 %v1612_v13 }
  0x3c   :  { %1624 = vmatpush.bf16.msrb.mxu3 %v1603_v16  ;;  %v1611_v16 = vld [vmem:[#allocation8 + $0x28] sm:$0xff] }
  0x3d   :  { %1082 = vmatpush.bf16.msra.mxu2 %v1611_v16 }
  0x40   :  { %1625 = vmatpush.bf16.msrb.mxu3 %v1602_v17  ;;  %v1610_v17 = vld [vmem:[#allocation8 + $0x20] sm:$0xff] }
  0x41   :  { %1083 = vmatpush.bf16.msra.mxu2 %v1610_v17 }
  0x43   :  { %427 = vmatmul.bf16.gmra.mxu0 %v1559_v9  ;;  %547 = vmatmul.bf16.gmra.mxu3 %v1583_v1  ;;  %v1588_v1 = vld [vmem:[#allocation2 + $0xf0] sm:$0xff] }
  0x44   :  { %1626 = vmatpush.bf16.msrb.mxu3 %v1601_v18 }
  0x48   :  { %1627 = vmatpush.bf16.msrb.mxu3 %v1600_v20 }
  0x4c   :  { %1628 = vmatpush.bf16.msrb.mxu3 %v1599_v21  ;;  %v1609_v21 = vld [vmem:[#allocation8 + $0x18] sm:$0xff] }
  0x4d   :  { %1084 = vmatpush.bf16.msra.mxu2 %v1609_v21 }
  0x50   :  { %1629 = vmatpush.bf16.msrb.mxu3 %v1598_v22 }
  0x53   :  { %432 = vmatmul.bf16.gmra.mxu0 %v1560_v10 }
  0x54   :  { %1630 = vmatpush.bf16.msra.mxu3 %v1613_v8 }
  0x58   :  { %1631 = vmatpush.bf16.msra.mxu3 %v1612_v13 }
  0x5c   :  { %1632 = vmatpush.bf16.msra.mxu3 %v1611_v16 }
  0x60   :  { %1633 = vmatpush.bf16.msra.mxu3 %v1610_v17  ;;  %v1589_v17 = vld [vmem:[#allocation2 + $0xf8] sm:$0xff] }
  0x63   :  { %437 = vmatmul.bf16.gmra.mxu0 %v1561_v11  ;;  %v1584_v11 = vld [vmem:[#allocation2 + $0xd0] sm:$0xff] }
  0x64   :  { %552 = vmatmul.bf16.gmra.mxu3 %v1584_v11 }
  0x65   :  { %1634 = vmatpush.bf16.msra.mxu3 %v1609_v21 }
  0x73   :  { %442 = vmatmul.bf16.gmra.mxu0 %v1562_v12 }
  0x83   :  { %447 = vmatmul.bf16.gmra.mxu0 %v1563_v14  ;;  %v1572_v14 = vld [vmem:[#allocation2 + $0x70] sm:$0xff] }
  0x93   :  { %452 = vmatmul.bf16.gmra.mxu0 %v1564_v19 }
  0xa3   :  { %457 = vmatmul.bf16.gmra.mxu0 %v1565_v23 }
  0xb0   :  { %v423_v25 = vpop.f32.mrf.mxu0 }
  0xb1   :  { %v424_v27 = vadd.f32 %v1843_v26, %v423_v25  ;;  %v1585_v25 = vld [vmem:[#allocation2 + $0xd8] sm:$0xff] }
  0xb2   :  { %557 = vmatmul.bf16.gmra.mxu3 %v1585_v25 }
  0xb3   :  { %462 = vmatmul.bf16.gmra.mxu0 %v1566_v24  ;;  %v583_v30 = vmax.f32 %v424_v27, 0.0  ;;  %v1608_v27 = vld [vmem:[#allocation8 + $0x10] sm:$0xff] }
  0xb4   :  { %1085 = vmatpush.bf16.msra.mxu2 %v1608_v27  ;;  %1635 = vmatpush.bf16.msra.mxu3 %v1608_v27 }
  0xb8   :  { %v425_v28 = vpop.f32.mrf.mxu0 }
  0xb9   :  { %v426_v29 = vadd.f32 %v1843_v26, %v425_v28  ;;  %v1573_v28 = vld [vmem:[#allocation2 + $0x78] sm:$0xff] }
  0xbb   :  { %v584_v31 = vmax.f32 %v426_v29, 0.0 }
  0xbd   :  { %v647_v32 = vpack.c.bf16 %v584_v31, %v583_v30  ;;  %v1607_v30 = vld [vmem:[#allocation8 + $0x8] sm:$0xff]  ;;  %v1606_v31 = vld [vmem:[#allocation8] sm:$0xff] }
  0xbe   :  { %1086 = vmatpush.bf16.msra.mxu2 %v1607_v30  ;;  %1636 = vmatpush.bf16.msra.mxu3 %v1607_v30 }
  0xbf   :  { %755 = vmatmul.bf16.vlgmr.msra.gmra.mxu1 %v647_v32 }
  0xc0   :  { %v428_v34 = vpop.f32.mrf.mxu0 }
  0xc1   :  { %v429_v35 = vadd.f32 %v1843_v26, %v428_v34 }
  0xc2   :  { %1087 = vmatpush.bf16.msra.mxu2 %v1606_v31  ;;  %1637 = vmatpush.bf16.msra.mxu3 %v1606_v31 }
  0xc3   :  { %467 = vmatmul.bf16.gmra.mxu0 %v1567_v33  ;;  %v585_v38 = vmax.f32 %v429_v35, 0.0 }
  0xc8   :  { %v430_v36 = vpop.f32.mrf.mxu0 }
  0xc9   :  { %v431_v37 = vadd.f32 %v1843_v26, %v430_v36 }
  0xcb   :  { %v586_v39 = vmax.f32 %v431_v37, 0.0 }
  0xcd   :  { %v648_v40 = vpack.c.bf16 %v586_v39, %v585_v38  ;;  %v1586_v38 = vld [vmem:[#allocation2 + $0xe0] sm:$0xff] }
  0xce   :  { %v1574_v39 = vld [vmem:[#allocation2 + $0x80] sm:$0xff]  ;;  %562 = vmatmul.bf16.gmra.mxu3 %v1586_v38 }
  0xcf   :  { %760 = vmatmul.bf16.gmra.mxu1 %v648_v40 }
  0xd0   :  { %v433_v42 = vpop.f32.mrf.mxu0 }
  0xd1   :  { %v434_v43 = vadd.f32 %v1843_v26, %v433_v42 }
  0xd3   :  { %472 = vmatmul.bf16.gmra.mxu0 %v1568_v41  ;;  %v587_v46 = vmax.f32 %v434_v43, 0.0 }
  0xd8   :  { %v435_v44 = vpop.f32.mrf.mxu0 }
  0xd9   :  { %v436_v45 = vadd.f32 %v1843_v26, %v435_v44 }
  0xdb   :  { %v588_v47 = vmax.f32 %v436_v45, 0.0 }
  0xdd   :  { %v649_v48 = vpack.c.bf16 %v588_v47, %v587_v46 }
  0xdf   :  { %765 = vmatmul.bf16.gmra.mxu1 %v649_v48  ;;  %v1587_v48 = vld [vmem:[#allocation2 + $0xe8] sm:$0xff] }
  0xe0   :  { %v438_v50 = vpop.f32.mrf.mxu0  ;;  %567 = vmatmul.bf16.gmra.mxu3 %v1587_v48 }
  0xe1   :  { %v439_v51 = vadd.f32 %v1843_v26, %v438_v50  ;;  %v1575_v50 = vld [vmem:[#allocation2 + $0x88] sm:$0xff] }
  0xe3   :  { %477 = vmatmul.bf16.gmra.mxu0 %v1569_v49  ;;  %v589_v54 = vmax.f32 %v439_v51, 0.0  ;;  %v1866_v49 = vld [vmem:[%s2051_s4] ss:$0 sm:$0xff] }
  0xe8   :  { %v440_v52 = vpop.f32.mrf.mxu0 }
  0xe9   :  { %v441_v53 = vadd.f32 %v1843_v26, %v440_v52 }
  0xeb   :  { %v590_v55 = vmax.f32 %v441_v53, 0.0 }
  0xed   :  { %v650_v57 = vpack.c.bf16 %v590_v55, %v589_v54 }
  0xef   :  { %770 = vmatmul.bf16.gmra.mxu1 %v650_v57 }
  0xf0   :  { %v443_v59 = vpop.f32.mrf.mxu0  ;;  %572 = vmatmul.bf16.gmra.mxu3 %v1588_v1 }
  0xf1   :  { %v444_v60 = vadd.f32 %v1843_v26, %v443_v59 }
  0xf3   :  { %482 = vmatmul.bf16.gmra.mxu0 %v1570_v58  ;;  %v591_v63 = vmax.f32 %v444_v60, 0.0 }
  0xf8   :  { %v445_v61 = vpop.f32.mrf.mxu0 }
  0xf9   :  { %v446_v62 = vadd.f32 %v1843_v26, %v445_v61 }
  0xfb   :  { %v592_v0 = vmax.f32 %v446_v62, 0.0 }
  0xfd   :  { %v651_v2 = vpack.c.bf16 %v592_v0, %v591_v63 }
  0xff   :  { %775 = vmatmul.bf16.gmra.mxu1 %v651_v2  ;;  %v1576_v2 = vld [vmem:[#allocation2 + $0x90] sm:$0xff] }
 0x100   :  { %v448_v4 = vpop.f32.mrf.mxu0  ;;  %577 = vmatmul.bf16.gmra.mxu3 %v1589_v17 }
 0x101   :  { %v449_v5 = vadd.f32 %v1843_v26, %v448_v4 }
 0x103   :  { %487 = vmatmul.bf16.gmra.mxu0 %v1571_v3  ;;  %v593_v9 = vmax.f32 %v449_v5, 0.0 }
 0x108   :  { %v450_v6 = vpop.f32.mrf.mxu0 }
 0x109   :  { %v451_v7 = vadd.f32 %v1843_v26, %v450_v6 }
 0x10b   :  { %v594_v10 = vmax.f32 %v451_v7, 0.0 }
 0x10d   :  { %v652_v12 = vpack.c.bf16 %v594_v10, %v593_v9 }
 0x10f   :  { %780 = vmatmul.bf16.gmra.mxu1 %v652_v12 }
 0x110   :  { %v453_v15 = vpop.f32.mrf.mxu0 }
 0x111   :  { %v454_v18 = vadd.f32 %v1843_v26, %v453_v15 }
 0x113   :  { %492 = vmatmul.bf16.gmra.mxu0 %v1572_v14  ;;  %v595_v22 = vmax.f32 %v454_v18, 0.0  ;;  %v1577_v18 = vld [vmem:[#allocation2 + $0x98] sm:$0xff] }
 0x118   :  { %v455_v19 = vpop.f32.mrf.mxu0 }
 0x119   :  { %v456_v20 = vadd.f32 %v1843_v26, %v455_v19 }
 0x11b   :  { %v596_v23 = vmax.f32 %v456_v20, 0.0 }
 0x11d   :  { %v653_v24 = vpack.c.bf16 %v596_v23, %v595_v22 }
 0x11f   :  { %785 = vmatmul.bf16.gmra.mxu1 %v653_v24 }
 0x120   :  { %v458_v29 = vpop.f32.mrf.mxu0 }
 0x121   :  { %v459_v32 = vadd.f32 %v1843_v26, %v458_v29 }
 0x123   :  { %497 = vmatmul.bf16.gmra.mxu0 %v1573_v28  ;;  %v597_v35 = vmax.f32 %v459_v32, 0.0 }
 0x128   :  { %v460_v33 = vpop.f32.mrf.mxu0 }
 0x129   :  { %v461_v34 = vadd.f32 %v1843_v26, %v460_v33 }
 0x12b   :  { %v598_v36 = vmax.f32 %v461_v34, 0.0  ;;  %v1578_v34 = vld [vmem:[#allocation2 + $0xa0] sm:$0xff] }
 0x12d   :  { %v654_v37 = vpack.c.bf16 %v598_v36, %v597_v35  ;;  %v543_v36 = vpop.f32.mrf.mxu3 }
 0x12f   :  { %790 = vmatmul.bf16.gmra.mxu1 %v654_v37 }
 0x130   :  { %v463_v40 = vpop.f32.mrf.mxu0 }
 0x131   :  { %v464_v41 = vadd.f32 %v1843_v26, %v463_v40 }
 0x133   :  { %502 = vmatmul.bf16.gmra.mxu0 %v1574_v39  ;;  %v599_v44 = vmax.f32 %v464_v41, 0.0 }
 0x138   :  { %v465_v42 = vpop.f32.mrf.mxu0 }
 0x139   :  { %v466_v43 = vadd.f32 %v1843_v26, %v465_v42 }
 0x13b   :  { %v600_v45 = vmax.f32 %v466_v43, 0.0  ;;  %v544_v43 = vadd.f32 %v1843_v26, %v543_v36 }
 0x13c   :  { %v756_v46 = vpop.f32.mrf.mxu1 }
 0x13d   :  { %v655_v47 = vpack.c.bf16 %v600_v45, %v599_v44  ;;  %v757_v52 = vadd.f32 %v1866_v49, %v756_v46 }
 0x13f   :  { %795 = vmatmul.bf16.gmra.mxu1 %v655_v47  ;;  %v916_v55 = vmax.f32 %v757_v52, 0.0  ;;  %v545_v47 = vpop.f32.mrf.mxu3 }
 0x140   :  { %v468_v51 = vpop.f32.mrf.mxu0  ;;  %v546_v52 = vadd.f32 %v1843_v26, %v545_v47 }
 0x141   :  { %v469_v56 = vadd.f32 %v1843_v26, %v468_v51  ;;  %v631_v51 = vmax.f32 %v544_v43, 0.0 }
 0x143   :  { %507 = vmatmul.bf16.gmra.mxu0 %v1575_v50  ;;  %v601_v61 = vmax.f32 %v469_v56, 0.0  ;;  %v1579_v56 = vld [vmem:[#allocation2 + $0xa8] sm:$0xff] }
 0x144   :  { %v758_v53 = vpop.f32.mrf.mxu1 }
 0x145   :  { %v759_v54 = vadd.f32 %v1866_v49, %v758_v53 }
 0x147   :  { %v917_v57 = vmax.f32 %v759_v54, 0.0 }
 0x148   :  { %v470_v58 = vpop.f32.mrf.mxu0 }
 0x149   :  { %v471_v59 = vadd.f32 %v1843_v26, %v470_v58  ;;  %v980_v60 = vpack.c.bf16 %v917_v57, %v916_v55  ;;  %v632_v55 = vmax.f32 %v546_v52, 0.0 }
 0x14b   :  { %v602_v62 = vmax.f32 %v471_v59, 0.0  ;;  %1088 = vmatmul.bf16.vlgmr.msra.gmra.mxu2 %v980_v60  ;;  %v671_v57 = vpack.c.bf16 %v632_v55, %v631_v51  ;;  %v548_v59 = vpop.f32.mrf.mxu3 }
 0x14c   :  { %v761_v63 = vpop.f32.mrf.mxu1 }
 0x14d   :  { %v656_v0 = vpack.c.bf16 %v602_v62, %v601_v61  ;;  %v762_v4 = vadd.f32 %v1866_v49, %v761_v63  ;;  %875 = vmatmul.bf16.vlgmr.msrb.gmra.mxu3 %v671_v57 }
 0x14f   :  { %800 = vmatmul.bf16.gmra.mxu1 %v656_v0  ;;  %v918_v7 = vmax.f32 %v762_v4, 0.0 }
 0x150   :  { %v473_v3 = vpop.f32.mrf.mxu0 }
 0x151   :  { %v474_v8 = vadd.f32 %v1843_v26, %v473_v3 }
 0x153   :  { %512 = vmatmul.bf16.gmra.mxu0 %v1576_v2  ;;  %v603_v13 = vmax.f32 %v474_v8, 0.0  ;;  %v549_v2 = vadd.f32 %v1843_v26, %v548_v59 }
 0x154   :  { %v763_v5 = vpop.f32.mrf.mxu1 }
 0x155   :  { %v764_v6 = vadd.f32 %v1866_v49, %v763_v5 }
 0x157   :  { %v919_v9 = vmax.f32 %v764_v6, 0.0  ;;  %v550_v6 = vpop.f32.mrf.mxu3 }
 0x158   :  { %v475_v10 = vpop.f32.mrf.mxu0 }
 0x159   :  { %v476_v11 = vadd.f32 %v1843_v26, %v475_v10  ;;  %v981_v12 = vpack.c.bf16 %v919_v9, %v918_v7  ;;  %v633_v9 = vmax.f32 %v549_v2, 0.0  ;;  %v551_v10 = vadd.f32 %v1843_v26, %v550_v6 }
 0x15b   :  { %v604_v14 = vmax.f32 %v476_v11, 0.0  ;;  %1093 = vmatmul.bf16.gmra.mxu2 %v981_v12 }
 0x15c   :  { %v766_v15 = vpop.f32.mrf.mxu1 }
 0x15d   :  { %v657_v16 = vpack.c.bf16 %v604_v14, %v603_v13  ;;  %v767_v20 = vadd.f32 %v1866_v49, %v766_v15  ;;  %v634_v13 = vmax.f32 %v551_v10, 0.0  ;;  %v1580_v14 = vld [vmem:[#allocation2 + $0xb0] sm:$0xff] }
 0x15f   :  { %805 = vmatmul.bf16.gmra.mxu1 %v657_v16  ;;  %v920_v23 = vmax.f32 %v767_v20, 0.0  ;;  %v672_v15 = vpack.c.bf16 %v634_v13, %v633_v9  ;;  %v553_v17 = vpop.f32.mrf.mxu3 }
 0x160   :  { %v478_v19 = vpop.f32.mrf.mxu0 }
 0x161   :  { %v479_v24 = vadd.f32 %v1843_v26, %v478_v19  ;;  %880 = vmatmul.bf16.gmra.mxu3 %v672_v15 }
 0x163   :  { %517 = vmatmul.bf16.gmra.mxu0 %v1577_v18  ;;  %v605_v30 = vmax.f32 %v479_v24, 0.0  ;;  %v554_v24 = vadd.f32 %v1843_v26, %v553_v17 }
 0x164   :  { %v768_v21 = vpop.f32.mrf.mxu1 }
 0x165   :  { %v769_v22 = vadd.f32 %v1866_v49, %v768_v21 }
 0x167   :  { %v921_v25 = vmax.f32 %v769_v22, 0.0 }
 0x168   :  { %v480_v27 = vpop.f32.mrf.mxu0 }
 0x169   :  { %v481_v28 = vadd.f32 %v1843_v26, %v480_v27  ;;  %v982_v29 = vpack.c.bf16 %v921_v25, %v920_v23 }
 0x16b   :  { %v606_v31 = vmax.f32 %v481_v28, 0.0  ;;  %1098 = vmatmul.bf16.gmra.mxu2 %v982_v29  ;;  %v555_v29 = vpop.f32.mrf.mxu3 }
 0x16c   :  { %v771_v32 = vpop.f32.mrf.mxu1 }
 0x16d   :  { %v658_v33 = vpack.c.bf16 %v606_v31, %v605_v30  ;;  %v772_v37 = vadd.f32 %v1866_v49, %v771_v32  ;;  %v635_v32 = vmax.f32 %v554_v24, 0.0 }
 0x16f   :  { %810 = vmatmul.bf16.gmra.mxu1 %v658_v33  ;;  %v922_v40 = vmax.f32 %v772_v37, 0.0  ;;  %v556_v33 = vadd.f32 %v1843_v26, %v555_v29  ;;  %v1581_v37 = vld [vmem:[#allocation2 + $0xb8] sm:$0xff] }
 0x170   :  { %v483_v35 = vpop.f32.mrf.mxu0 }
 0x171   :  { %v484_v41 = vadd.f32 %v1843_v26, %v483_v35  ;;  %v636_v36 = vmax.f32 %v556_v33, 0.0 }
 0x173   :  { %522 = vmatmul.bf16.gmra.mxu0 %v1578_v34  ;;  %v607_v48 = vmax.f32 %v484_v41, 0.0 }
 0x174   :  { %v773_v38 = vpop.f32.mrf.mxu1 }
 0x175   :  { %v774_v39 = vadd.f32 %v1866_v49, %v773_v38  ;;  %v673_v38 = vpack.c.bf16 %v636_v36, %v635_v32 }
 0x177   :  { %v923_v42 = vmax.f32 %v774_v39, 0.0  ;;  %885 = vmatmul.bf16.gmra.mxu3 %v673_v38 }
 0x178   :  { %v485_v44 = vpop.f32.mrf.mxu0 }
 0x179   :  { %v486_v45 = vadd.f32 %v1843_v26, %v485_v44  ;;  %v983_v46 = vpack.c.bf16 %v923_v42, %v922_v40  ;;  %v558_v40 = vpop.f32.mrf.mxu3 }
 0x17a   :  { %v559_v47 = vadd.f32 %v1843_v26, %v558_v40 }
 0x17b   :  { %v608_v50 = vmax.f32 %v486_v45, 0.0  ;;  %1103 = vmatmul.bf16.gmra.mxu2 %v983_v46 }
 0x17c   :  { %v776_v53 = vpop.f32.mrf.mxu1  ;;  %v637_v55 = vmax.f32 %v559_v47, 0.0 }
 0x17d   :  { %v659_v54 = vpack.c.bf16 %v608_v50, %v607_v48  ;;  %v777_v60 = vadd.f32 %v1866_v49, %v776_v53 }
 0x17f   :  { %815 = vmatmul.bf16.gmra.mxu1 %v659_v54  ;;  %v924_v63 = vmax.f32 %v777_v60, 0.0 }
 0x180   :  { %v488_v58 = vpop.f32.mrf.mxu0 }
 0x181   :  { %v489_v0 = vadd.f32 %v1843_v26, %v488_v58  ;;  %v560_v52 = vpop.f32.mrf.mxu3 }
 0x183   :  { %527 = vmatmul.bf16.gmra.mxu0 %v1579_v56  ;;  %v609_v7 = vmax.f32 %v489_v0, 0.0  ;;  %v561_v56 = vadd.f32 %v1843_v26, %v560_v52 }
 0x184   :  { %v778_v61 = vpop.f32.mrf.mxu1 }
 0x185   :  { %v779_v62 = vadd.f32 %v1866_v49, %v778_v61  ;;  %v638_v59 = vmax.f32 %v561_v56, 0.0 }
 0x187   :  { %v925_v1 = vmax.f32 %v779_v62, 0.0  ;;  %v674_v60 = vpack.c.bf16 %v638_v59, %v637_v55 }
 0x188   :  { %v490_v3 = vpop.f32.mrf.mxu0 }
 0x189   :  { %v491_v4 = vadd.f32 %v1843_v26, %v490_v3  ;;  %v984_v5 = vpack.c.bf16 %v925_v1, %v924_v63  ;;  %890 = vmatmul.bf16.gmra.mxu3 %v674_v60  ;;  %v563_v62 = vpop.f32.mrf.mxu3 }
 0x18b   :  { %v610_v8 = vmax.f32 %v491_v4, 0.0  ;;  %1108 = vmatmul.bf16.gmra.mxu2 %v984_v5  ;;  %v564_v5 = vadd.f32 %v1843_v26, %v563_v62 }
 0x18c   :  { %v781_v11 = vpop.f32.mrf.mxu1 }
 0x18d   :  { %v660_v12 = vpack.c.bf16 %v610_v8, %v609_v7  ;;  %v782_v18 = vadd.f32 %v1866_v49, %v781_v11 }
 0x18f   :  { %820 = vmatmul.bf16.gmra.mxu1 %v660_v12  ;;  %v926_v21 = vmax.f32 %v782_v18, 0.0  ;;  %v639_v12 = vmax.f32 %v564_v5, 0.0 }
 0x190   :  { %v493_v16 = vpop.f32.mrf.mxu0 }
 0x191   :  { %v494_v22 = vadd.f32 %v1843_v26, %v493_v16  ;;  %v565_v9 = vpop.f32.mrf.mxu3 }
 0x192   :  { %v566_v13 = vadd.f32 %v1843_v26, %v565_v9 }
 0x193   :  { %532 = vmatmul.bf16.gmra.mxu0 %v1580_v14  ;;  %v611_v30 = vmax.f32 %v494_v22, 0.0 }
 0x194   :  { %v783_v19 = vpop.f32.mrf.mxu1  ;;  %v640_v16 = vmax.f32 %v566_v13, 0.0 }
 0x195   :  { %v784_v20 = vadd.f32 %v1866_v49, %v783_v19 }
 0x196   :  { %v675_v17 = vpack.c.bf16 %v640_v16, %v639_v12 }
 0x197   :  { %v927_v23 = vmax.f32 %v784_v20, 0.0 }
 0x198   :  { %v495_v25 = vpop.f32.mrf.mxu0 }
 0x199   :  { %v496_v27 = vadd.f32 %v1843_v26, %v495_v25  ;;  %v985_v28 = vpack.c.bf16 %v927_v23, %v926_v21  ;;  %895 = vmatmul.bf16.gmra.mxu3 %v675_v17  ;;  %v568_v19 = vpop.f32.mrf.mxu3 }
 0x19b   :  { %v612_v31 = vmax.f32 %v496_v27, 0.0  ;;  %1113 = vmatmul.bf16.gmra.mxu2 %v985_v28  ;;  %v569_v27 = vadd.f32 %v1843_v26, %v568_v19 }
 0x19c   :  { %v786_v34 = vpop.f32.mrf.mxu1 }
 0x19d   :  { %v661_v35 = vpack.c.bf16 %v612_v31, %v611_v30  ;;  %v787_v41 = vadd.f32 %v1866_v49, %v786_v34  ;;  %v1918_v34 = vld [vmem:[%s2053_s6] ss:$0 sm:$0xff] }
 0x19f   :  { %825 = vmatmul.bf16.gmra.mxu1 %v661_v35  ;;  %v928_v44 = vmax.f32 %v787_v41, 0.0  ;;  %v641_v35 = vmax.f32 %v569_v27, 0.0 }
 0x1a0   :  { %v498_v39 = vpop.f32.mrf.mxu0 }
 0x1a1   :  { %v499_v45 = vadd.f32 %v1843_v26, %v498_v39  ;;  %v570_v31 = vpop.f32.mrf.mxu3 }
 0x1a2   :  { %v571_v36 = vadd.f32 %v1843_v26, %v570_v31 }
 0x1a3   :  { %537 = vmatmul.bf16.gmra.mxu0 %v1581_v37  ;;  %v613_v53 = vmax.f32 %v499_v45, 0.0 }
 0x1a4   :  { %v788_v42 = vpop.f32.mrf.mxu1  ;;  %v642_v39 = vmax.f32 %v571_v36, 0.0 }
 0x1a5   :  { %v789_v43 = vadd.f32 %v1866_v49, %v788_v42 }
 0x1a6   :  { %v676_v42 = vpack.c.bf16 %v642_v39, %v641_v35 }
 0x1a7   :  { %v929_v46 = vmax.f32 %v789_v43, 0.0 }
 0x1a8   :  { %v500_v48 = vpop.f32.mrf.mxu0 }
 0x1a9   :  { %v501_v50 = vadd.f32 %v1843_v26, %v500_v48  ;;  %v986_v51 = vpack.c.bf16 %v929_v46, %v928_v44  ;;  %900 = vmatmul.bf16.gmra.mxu3 %v676_v42  ;;  %v573_v45 = vpop.f32.mrf.mxu3 }
 0x1ab   :  { %v614_v54 = vmax.f32 %v501_v50, 0.0  ;;  %1118 = vmatmul.bf16.gmra.mxu2 %v986_v51 }
 0x1ac   :  { %v791_v57 = vpop.f32.mrf.mxu1 }
 0x1ad   :  { %v662_v58 = vpack.c.bf16 %v614_v54, %v613_v53  ;;  %v792_v63 = vadd.f32 %v1866_v49, %v791_v57  ;;  %v574_v54 = vadd.f32 %v1843_v26, %v573_v45 }
 0x1af   :  { %830 = vmatmul.bf16.gmra.mxu1 %v662_v58  ;;  %v930_v2 = vmax.f32 %v792_v63, 0.0 }
 0x1b0   :  { %v503_v61 = vpop.f32.mrf.mxu0 }
 0x1b1   :  { %v504_v3 = vadd.f32 %v1843_v26, %v503_v61  ;;  %v575_v58 = vpop.f32.mrf.mxu3  ;;  %v643_v61 = vmax.f32 %v574_v54, 0.0 }
 0x1b2   :  { %v576_v62 = vadd.f32 %v1843_v26, %v575_v58 }
 0x1b3   :  { %v615_v10 = vmax.f32 %v504_v3, 0.0 }
 0x1b4   :  { %v793_v0 = vpop.f32.mrf.mxu1 }
 0x1b5   :  { %v794_v1 = vadd.f32 %v1866_v49, %v793_v0 }
 0x1b7   :  { %v931_v4 = vmax.f32 %v794_v1, 0.0  ;;  %v644_v1 = vmax.f32 %v576_v62, 0.0 }
 0x1b8   :  { %v505_v6 = vpop.f32.mrf.mxu0 }
 0x1b9   :  { %v506_v7 = vadd.f32 %v1843_v26, %v505_v6  ;;  %v987_v8 = vpack.c.bf16 %v931_v4, %v930_v2  ;;  %v677_v4 = vpack.c.bf16 %v644_v1, %v643_v61 }
 0x1bb   :  { %v616_v11 = vmax.f32 %v506_v7, 0.0  ;;  %1123 = vmatmul.bf16.gmra.mxu2 %v987_v8  ;;  %905 = vmatmul.bf16.gmra.mxu3 %v677_v4  ;;  %v578_v7 = vpop.f32.mrf.mxu3 }
 0x1bc   :  { %v796_v14 = vpop.f32.mrf.mxu1 }
 0x1bd   :  { %v663_v15 = vpack.c.bf16 %v616_v11, %v615_v10  ;;  %v797_v20 = vadd.f32 %v1866_v49, %v796_v14 }
 0x1bf   :  { %835 = vmatmul.bf16.gmra.mxu1 %v663_v15  ;;  %v932_v23 = vmax.f32 %v797_v20, 0.0  ;;  %v579_v15 = vadd.f32 %v1843_v26, %v578_v7 }
 0x1c0   :  { %v508_v18 = vpop.f32.mrf.mxu0 }
 0x1c1   :  { %v509_v24 = vadd.f32 %v1843_v26, %v508_v18 }
 0x1c3   :  { %v617_v32 = vmax.f32 %v509_v24, 0.0  ;;  %v580_v19 = vpop.f32.mrf.mxu3 }
 0x1c4   :  { %v798_v21 = vpop.f32.mrf.mxu1 }
 0x1c5   :  { %v799_v22 = vadd.f32 %v1866_v49, %v798_v21 }
 0x1c7   :  { %v933_v25 = vmax.f32 %v799_v22, 0.0  ;;  %v645_v22 = vmax.f32 %v579_v15, 0.0 }
 0x1c8   :  { %v510_v28 = vpop.f32.mrf.mxu0 }
 0x1c9   :  { %v511_v29 = vadd.f32 %v1843_v26, %v510_v28  ;;  %v988_v30 = vpack.c.bf16 %v933_v25, %v932_v23  ;;  %v581_v23 = vadd.f32 %v1843_v26, %v580_v19 }
 0x1cb   :  { %v618_v33 = vmax.f32 %v511_v29, 0.0  ;;  %1128 = vmatmul.bf16.gmra.mxu2 %v988_v30  ;;  %v646_v27 = vmax.f32 %v581_v23, 0.0 }
 0x1cc   :  { %v801_v37 = vpop.f32.mrf.mxu1 }
 0x1cd   :  { %v664_v38 = vpack.c.bf16 %v618_v33, %v617_v32  ;;  %v802_v44 = vadd.f32 %v1866_v49, %v801_v37  ;;  %v678_v30 = vpack.c.bf16 %v646_v27, %v645_v22 }
 0x1ce   :  { %v1089_v40 = vpop.f32.mrf.mxu2 }
 0x1cf   :  { %v1090_v41 = vadd.f32 %v1918_v34, %v1089_v40  ;;  %840 = vmatmul.bf16.gmra.mxu1 %v664_v38  ;;  %v934_v48 = vmax.f32 %v802_v44, 0.0  ;;  %910 = vmatmul.bf16.gmra.mxu3 %v678_v30 }
 0x1d0   :  { %v513_v43 = vpop.f32.mrf.mxu0  ;;  %v876_v54 = vpop.f32.mrf.mxu3 }
 0x1d1   :  { %1249 = vst [vmem:[#allocation10] sm:$0xff] %v1090_v41  ;;  %v514_v51 = vadd.f32 %v1843_v26, %v513_v43 }
 0x1d3   :  { %v619_v59 = vmax.f32 %v514_v51, 0.0 }
 0x1d4   :  { %v803_v46 = vpop.f32.mrf.mxu1 }
 0x1d5   :  { %v804_v47 = vadd.f32 %v1866_v49, %v803_v46 }
 0x1d6   :  { %v1091_v50 = vpop.f32.mrf.mxu2 }
 0x1d7   :  { %v935_v52 = vmax.f32 %v804_v47, 0.0  ;;  %v1092_v53 = vadd.f32 %v1918_v34, %v1091_v50 }
 0x1d8   :  { %v515_v55 = vpop.f32.mrf.mxu0  ;;  %v878_v4 = vpop.f32.mrf.mxu3 }
 0x1d9   :  { %1250 = vst [vmem:[#allocation10 + $0x8] sm:$0xff] %v1092_v53  ;;  %v516_v56 = vadd.f32 %v1843_v26, %v515_v55  ;;  %v989_v57 = vpack.c.bf16 %v935_v52, %v934_v48  ;;  %v879_v7 = vadd.f32 %v1866_v49, %v878_v4 }
 0x1db   :  { %v620_v60 = vmax.f32 %v516_v56, 0.0  ;;  %1133 = vmatmul.bf16.gmra.mxu2 %v989_v57 }
 0x1dc   :  { %v806_v63 = vpop.f32.mrf.mxu1 }
 0x1dd   :  { %v665_v0 = vpack.c.bf16 %v620_v60, %v619_v59  ;;  %v807_v6 = vadd.f32 %v1866_v49, %v806_v63 }
 0x1de   :  { %v1094_v2 = vpop.f32.mrf.mxu2 }
 0x1df   :  { %v1095_v3 = vadd.f32 %v1918_v34, %v1094_v2  ;;  %845 = vmatmul.bf16.gmra.mxu1 %v665_v0  ;;  %v936_v10 = vmax.f32 %v807_v6, 0.0  ;;  %v877_v0 = vadd.f32 %v1866_v49, %v876_v54 }
 0x1e0   :  { %v518_v5 = vpop.f32.mrf.mxu0 }
 0x1e1   :  { %1251 = vst [vmem:[#allocation10 + $0x10] sm:$0xff] %v1095_v3  ;;  %v519_v12 = vadd.f32 %v1843_v26, %v518_v5  ;;  %v964_v6 = vmax.f32 %v877_v0, 0.0 }
 0x1e3   :  { %v621_v20 = vmax.f32 %v519_v12, 0.0 }
 0x1e4   :  { %v808_v8 = vpop.f32.mrf.mxu1  ;;  %v881_v15 = vpop.f32.mrf.mxu3 }
 0x1e5   :  { %v809_v9 = vadd.f32 %v1866_v49, %v808_v8 }
 0x1e6   :  { %v1096_v11 = vpop.f32.mrf.mxu2 }
 0x1e7   :  { %v937_v13 = vmax.f32 %v809_v9, 0.0  ;;  %v1097_v14 = vadd.f32 %v1918_v34, %v1096_v11 }
 0x1e8   :  { %v520_v16 = vpop.f32.mrf.mxu0 }
 0x1e9   :  { %1252 = vst [vmem:[#allocation10 + $0x18] sm:$0xff] %v1097_v14  ;;  %v521_v17 = vadd.f32 %v1843_v26, %v520_v16  ;;  %v990_v18 = vpack.c.bf16 %v937_v13, %v936_v10  ;;  %v965_v10 = vmax.f32 %v879_v7, 0.0 }
 0x1eb   :  { %v622_v21 = vmax.f32 %v521_v17, 0.0  ;;  %1138 = vmatmul.bf16.gmra.mxu2 %v990_v18  ;;  %v1004_v12 = vpack.c.bf16 %v965_v10, %v964_v6 }
 0x1ec   :  { %v811_v24 = vpop.f32.mrf.mxu1  ;;  %v883_v30 = vpop.f32.mrf.mxu3 }
 0x1ed   :  { %v666_v25 = vpack.c.bf16 %v622_v21, %v621_v20  ;;  %v812_v32 = vadd.f32 %v1866_v49, %v811_v24  ;;  %1208 = vmatmul.bf16.vlgmr.msra.gmra.mxu3 %v1004_v12 }
 0x1ee   :  { %v1099_v28 = vpop.f32.mrf.mxu2 }
 0x1ef   :  { %v1100_v29 = vadd.f32 %v1918_v34, %v1099_v28  ;;  %850 = vmatmul.bf16.gmra.mxu1 %v666_v25  ;;  %v938_v37 = vmax.f32 %v812_v32, 0.0  ;;  %v882_v25 = vadd.f32 %v1866_v49, %v881_v15 }
 0x1f0   :  { %v523_v31 = vpop.f32.mrf.mxu0 }
 0x1f1   :  { %1253 = vst [vmem:[#allocation10 + $0x20] sm:$0xff] %v1100_v29  ;;  %v524_v38 = vadd.f32 %v1843_v26, %v523_v31  ;;  %v966_v32 = vmax.f32 %v882_v25, 0.0 }
 0x1f3   :  { %v623_v44 = vmax.f32 %v524_v38, 0.0 }
 0x1f4   :  { %v813_v33 = vpop.f32.mrf.mxu1 }
 0x1f5   :  { %v814_v35 = vadd.f32 %v1866_v49, %v813_v33  ;;  %v884_v33 = vadd.f32 %v1866_v49, %v883_v30 }
 0x1f6   :  { %v1101_v36 = vpop.f32.mrf.mxu2 }
 0x1f7   :  { %v939_v39 = vmax.f32 %v814_v35, 0.0  ;;  %v1102_v40 = vadd.f32 %v1918_v34, %v1101_v36 }
 0x1f8   :  { %v525_v41 = vpop.f32.mrf.mxu0 }
 0x1f9   :  { %1254 = vst [vmem:[#allocation10 + $0x28] sm:$0xff] %v1102_v40  ;;  %v526_v42 = vadd.f32 %v1843_v26, %v525_v41  ;;  %v991_v43 = vpack.c.bf16 %v939_v39, %v938_v37  ;;  %v967_v37 = vmax.f32 %v884_v33, 0.0 }
 0x1fb   :  { %v624_v45 = vmax.f32 %v526_v42, 0.0  ;;  %1143 = vmatmul.bf16.gmra.mxu2 %v991_v43  ;;  %v1005_v39 = vpack.c.bf16 %v967_v37, %v966_v32  ;;  %v886_v42 = vpop.f32.mrf.mxu3 }
 0x1fc   :  { %v816_v46 = vpop.f32.mrf.mxu1 }
 0x1fd   :  { %v667_v47 = vpack.c.bf16 %v624_v45, %v623_v44  ;;  %v817_v52 = vadd.f32 %v1866_v49, %v816_v46  ;;  %1213 = vmatmul.bf16.gmra.mxu3 %v1005_v39 }
 0x1fe   :  { %v1104_v48 = vpop.f32.mrf.mxu2 }
 0x1ff   :  { %v1105_v50 = vadd.f32 %v1918_v34, %v1104_v48  ;;  %855 = vmatmul.bf16.gmra.mxu1 %v667_v47  ;;  %v940_v57 = vmax.f32 %v817_v52, 0.0 }
 0x200   :  { %v528_v51 = vpop.f32.mrf.mxu0 }
 0x201   :  { %1255 = vst [vmem:[#allocation10 + $0x30] sm:$0xff] %v1105_v50  ;;  %v529_v58 = vadd.f32 %v1843_v26, %v528_v51 }
 0x203   :  { %v625_v1 = vmax.f32 %v529_v58, 0.0 }
 0x204   :  { %v818_v53 = vpop.f32.mrf.mxu1 }
 0x205   :  { %v819_v55 = vadd.f32 %v1866_v49, %v818_v53  ;;  %v887_v53 = vadd.f32 %v1866_v49, %v886_v42 }
 0x206   :  { %v1106_v56 = vpop.f32.mrf.mxu2 }
 0x207   :  { %v941_v59 = vmax.f32 %v819_v55, 0.0  ;;  %v1107_v60 = vadd.f32 %v1918_v34, %v1106_v56 }
 0x208   :  { %v530_v61 = vpop.f32.mrf.mxu0 }
 0x209   :  { %v992_v62 = vpack.c.bf16 %v941_v59, %v940_v57  ;;  %1256 = vst [vmem:[#allocation10 + $0x38] sm:$0xff] %v1107_v60  ;;  %v531_v63 = vadd.f32 %v1843_v26, %v530_v61  ;;  %v888_v57 = vpop.f32.mrf.mxu3  ;;  %v968_v59 = vmax.f32 %v887_v53, 0.0 }
 0x20a   :  { %v889_v60 = vadd.f32 %v1866_v49, %v888_v57 }
 0x20b   :  { %v626_v2 = vmax.f32 %v531_v63, 0.0  ;;  %1148 = vmatmul.bf16.gmra.mxu2 %v992_v62 }
 0x20c   :  { %v821_v3 = vpop.f32.mrf.mxu1  ;;  %v969_v63 = vmax.f32 %v889_v60, 0.0 }
 0x20d   :  { %v668_v5 = vpack.c.bf16 %v626_v2, %v625_v1  ;;  %v822_v13 = vadd.f32 %v1866_v49, %v821_v3 }
 0x20e   :  { %v1109_v8 = vpop.f32.mrf.mxu2  ;;  %v1006_v0 = vpack.c.bf16 %v969_v63, %v968_v59 }
 0x20f   :  { %v1110_v9 = vadd.f32 %v1918_v34, %v1109_v8  ;;  %860 = vmatmul.bf16.gmra.mxu1 %v668_v5  ;;  %v942_v18 = vmax.f32 %v822_v13, 0.0 }
 0x210   :  { %v533_v11 = vpop.f32.mrf.mxu0  ;;  %1218 = vmatmul.bf16.gmra.mxu3 %v1006_v0 }
 0x211   :  { %1257 = vst [vmem:[#allocation10 + $0x40] sm:$0xff] %v1110_v9  ;;  %v534_v19 = vadd.f32 %v1843_v26, %v533_v11  ;;  %v891_v2 = vpop.f32.mrf.mxu3 }
 0x212   :  { %v892_v9 = vadd.f32 %v1866_v49, %v891_v2 }
 0x213   :  { %v627_v27 = vmax.f32 %v534_v19, 0.0 }
 0x214   :  { %v823_v14 = vpop.f32.mrf.mxu1  ;;  %v970_v12 = vmax.f32 %v892_v9, 0.0 }
 0x215   :  { %v824_v16 = vadd.f32 %v1866_v49, %v823_v14 }
 0x216   :  { %v1111_v17 = vpop.f32.mrf.mxu2 }
 0x217   :  { %v943_v20 = vmax.f32 %v824_v16, 0.0  ;;  %v1112_v21 = vadd.f32 %v1918_v34, %v1111_v17 }
 0x218   :  { %v535_v22 = vpop.f32.mrf.mxu0 }
 0x219   :  { %v993_v23 = vpack.c.bf16 %v943_v20, %v942_v18  ;;  %1258 = vst [vmem:[#allocation10 + $0x48] sm:$0xff] %v1112_v21  ;;  %v536_v24 = vadd.f32 %v1843_v26, %v535_v22  ;;  %v893_v11 = vpop.f32.mrf.mxu3 }
 0x21a   :  { %v894_v13 = vadd.f32 %v1866_v49, %v893_v11 }
 0x21b   :  { %v628_v28 = vmax.f32 %v536_v24, 0.0  ;;  %1153 = vmatmul.bf16.gmra.mxu2 %v993_v23 }
 0x21c   :  { %v826_v29 = vpop.f32.mrf.mxu1  ;;  %v971_v16 = vmax.f32 %v894_v13, 0.0 }
 0x21d   :  { %v669_v31 = vpack.c.bf16 %v628_v28, %v627_v27  ;;  %v827_v40 = vadd.f32 %v1866_v49, %v826_v29 }
 0x21e   :  { %v1114_v35 = vpop.f32.mrf.mxu2  ;;  %v1007_v17 = vpack.c.bf16 %v971_v16, %v970_v12 }
 0x21f   :  { %v1115_v36 = vadd.f32 %v1918_v34, %v1114_v35  ;;  %865 = vmatmul.bf16.gmra.mxu1 %v669_v31  ;;  %v944_v45 = vmax.f32 %v827_v40, 0.0 }
 0x220   :  { %v538_v38 = vpop.f32.mrf.mxu0  ;;  %1223 = vmatmul.bf16.gmra.mxu3 %v1007_v17 }
 0x221   :  { %1259 = vst [vmem:[#allocation10 + $0x50] sm:$0xff] %v1115_v36  ;;  %v539_v46 = vadd.f32 %v1843_v26, %v538_v38  ;;  %v896_v20 = vpop.f32.mrf.mxu3 }
 0x222   :  { %v897_v28 = vadd.f32 %v1866_v49, %v896_v20 }
 0x223   :  { %v629_v54 = vmax.f32 %v539_v46, 0.0 }
 0x224   :  { %v828_v41 = vpop.f32.mrf.mxu1  ;;  %v972_v31 = vmax.f32 %v897_v28, 0.0 }
 0x225   :  { %v829_v43 = vadd.f32 %v1866_v49, %v828_v41 }
 0x226   :  { %v1116_v44 = vpop.f32.mrf.mxu2 }
 0x227   :  { %v945_v47 = vmax.f32 %v829_v43, 0.0  ;;  %v1117_v48 = vadd.f32 %v1918_v34, %v1116_v44 }
 0x228   :  { %v540_v50 = vpop.f32.mrf.mxu0 }
 0x229   :  { %v994_v51 = vpack.c.bf16 %v945_v47, %v944_v45  ;;  %1260 = vst [vmem:[#allocation10 + $0x58] sm:$0xff] %v1117_v48  ;;  %v541_v52 = vadd.f32 %v1843_v26, %v540_v50  ;;  %v898_v30 = vpop.f32.mrf.mxu3 }
 0x22a   :  { %v899_v32 = vadd.f32 %v1866_v49, %v898_v30 }
 0x22b   :  { %v630_v55 = vmax.f32 %v541_v52, 0.0  ;;  %1158 = vmatmul.bf16.gmra.mxu2 %v994_v51 }
 0x22c   :  { %v831_v56 = vpop.f32.mrf.mxu1  ;;  %v973_v36 = vmax.f32 %v899_v32, 0.0 }
 0x22d   :  { %v670_v58 = vpack.c.bf16 %v630_v55, %v629_v54  ;;  %v832_v26 = vadd.f32 %v1866_v49, %v831_v56 }
 0x22e   :  { %v1119_v61 = vpop.f32.mrf.mxu2  ;;  %v1008_v37 = vpack.c.bf16 %v973_v36, %v972_v31 }
 0x22f   :  { %v1120_v62 = vadd.f32 %v1918_v34, %v1119_v61  ;;  %870 = vmatmul.bf16.gmra.mxu1 %v670_v58  ;;  %v946_v5 = vmax.f32 %v832_v26, 0.0 }
 0x230   :  { %1228 = vmatmul.bf16.gmra.mxu3 %v1008_v37 }
 0x231   :  { %1261 = vst [vmem:[#allocation10 + $0x60] sm:$0xff] %v1120_v62  ;;  %v901_v40 = vpop.f32.mrf.mxu3 }
 0x232   :  { %v902_v47 = vadd.f32 %v1866_v49, %v901_v40 }
 0x234   :  { %v833_v1 = vpop.f32.mrf.mxu1  ;;  %v974_v51 = vmax.f32 %v902_v47, 0.0 }
 0x235   :  { %v834_v3 = vadd.f32 %v1866_v49, %v833_v1 }
 0x236   :  { %v1121_v4 = vpop.f32.mrf.mxu2 }
 0x237   :  { %v947_v6 = vmax.f32 %v834_v3, 0.0  ;;  %v1122_v7 = vadd.f32 %v1918_v34, %v1121_v4 }
 0x239   :  { %v995_v8 = vpack.c.bf16 %v947_v6, %v946_v5  ;;  %1262 = vst [vmem:[#allocation10 + $0x68] sm:$0xff] %v1122_v7  ;;  %v903_v50 = vpop.f32.mrf.mxu3 }
 0x23a   :  { %v904_v52 = vadd.f32 %v1866_v49, %v903_v50 }
 0x23b   :  { %1163 = vmatmul.bf16.gmra.mxu2 %v995_v8 }
 0x23c   :  { %v836_v10 = vpop.f32.mrf.mxu1  ;;  %v975_v55 = vmax.f32 %v904_v52, 0.0 }
 0x23d   :  { %v837_v18 = vadd.f32 %v1866_v49, %v836_v10 }
 0x23e   :  { %v1124_v14 = vpop.f32.mrf.mxu2  ;;  %v1009_v56 = vpack.c.bf16 %v975_v55, %v974_v51 }
 0x23f   :  { %v1125_v15 = vadd.f32 %v1918_v34, %v1124_v14  ;;  %v948_v23 = vmax.f32 %v837_v18, 0.0 }
 0x240   :  { %1233 = vmatmul.bf16.gmra.mxu3 %v1009_v56 }
 0x241   :  { %1263 = vst [vmem:[#allocation10 + $0x70] sm:$0xff] %v1125_v15  ;;  %v906_v59 = vpop.f32.mrf.mxu3 }
 0x242   :  { %v907_v1 = vadd.f32 %v1866_v49, %v906_v59 }
 0x244   :  { %v838_v19 = vpop.f32.mrf.mxu1  ;;  %v976_v4 = vmax.f32 %v907_v1, 0.0 }
 0x245   :  { %v839_v21 = vadd.f32 %v1866_v49, %v838_v19 }
 0x246   :  { %v1126_v22 = vpop.f32.mrf.mxu2 }
 0x247   :  { %v949_v24 = vmax.f32 %v839_v21, 0.0  ;;  %v1127_v25 = vadd.f32 %v1918_v34, %v1126_v22 }
 0x249   :  { %v996_v27 = vpack.c.bf16 %v949_v24, %v948_v23  ;;  %1264 = vst [vmem:[#allocation10 + $0x78] sm:$0xff] %v1127_v25  ;;  %v908_v3 = vpop.f32.mrf.mxu3 }
 0x24a   :  { %v909_v5 = vadd.f32 %v1866_v49, %v908_v3 }
 0x24b   :  { %1168 = vmatmul.bf16.gmra.mxu2 %v996_v27 }
 0x24c   :  { %v841_v29 = vpop.f32.mrf.mxu1  ;;  %v977_v8 = vmax.f32 %v909_v5, 0.0 }
 0x24d   :  { %v842_v38 = vadd.f32 %v1866_v49, %v841_v29 }
 0x24e   :  { %v1129_v33 = vpop.f32.mrf.mxu2  ;;  %v1010_v9 = vpack.c.bf16 %v977_v8, %v976_v4 }
 0x24f   :  { %v1130_v35 = vadd.f32 %v1918_v34, %v1129_v33  ;;  %v950_v43 = vmax.f32 %v842_v38, 0.0 }
 0x250   :  { %1238 = vmatmul.bf16.gmra.mxu3 %v1010_v9 }
 0x251   :  { %1265 = vst [vmem:[#allocation10 + $0x80] sm:$0xff] %v1130_v35 }
 0x252   :  { %v911_v12 = vpop.f32.mrf.mxu3 }
 0x253   :  { %v912_v19 = vadd.f32 %v1866_v49, %v911_v12 }
 0x254   :  { %v843_v39 = vpop.f32.mrf.mxu1 }
 0x255   :  { %v844_v41 = vadd.f32 %v1866_v49, %v843_v39  ;;  %v978_v22 = vmax.f32 %v912_v19, 0.0 }
 0x256   :  { %v1131_v42 = vpop.f32.mrf.mxu2 }
 0x257   :  { %v951_v44 = vmax.f32 %v844_v41, 0.0  ;;  %v1132_v45 = vadd.f32 %v1918_v34, %v1131_v42  ;;  %v1650_v41 = vld [vmem:[%s2051_s4] ss:$0 sm:$0xff]  ;;  %s1785_s4 = smov [#allocation10]  }
 0x258   :  { %s1317_s25 = sshll.u32 %s1785_s4, 4  ;;  %s1318_s25 = int_to_ptr.vmem [resolvable:$true] %s1317_s25 }
 0x259   :  { %v997_v46 = vpack.c.bf16 %v951_v44, %v950_v43  ;;  %1266 = vst [vmem:[#allocation10 + $0x88] sm:$0xff] %v1132_v45 }
 0x25a   :  { %v913_v21 = vpop.f32.mrf.mxu3 }
 0x25b   :  { %1173 = vmatmul.bf16.gmra.mxu2 %v997_v46  ;;  %v914_v23 = vadd.f32 %v1866_v49, %v913_v21 }
 0x25c   :  { %v846_v48 = vpop.f32.mrf.mxu1 }
 0x25d   :  { %v847_v57 = vadd.f32 %v1866_v49, %v846_v48  ;;  %v979_v27 = vmax.f32 %v914_v23, 0.0 }
 0x25e   :  { %v1134_v53 = vpop.f32.mrf.mxu2 }
 0x25f   :  { %v1135_v54 = vadd.f32 %v1918_v34, %v1134_v53  ;;  %v952_v62 = vmax.f32 %v847_v57, 0.0  ;;  %v1011_v28 = vpack.c.bf16 %v979_v27, %v978_v22 }
 0x261   :  { %1267 = vst [vmem:[#allocation10 + $0x90] sm:$0xff] %v1135_v54  ;;  %1243 = vmatmul.bf16.gmra.mxu3 %v1011_v28 }
 0x264   :  { %v848_v58 = vpop.f32.mrf.mxu1 }
 0x265   :  { %v849_v60 = vadd.f32 %v1866_v49, %v848_v58 }
 0x266   :  { %v1136_v61 = vpop.f32.mrf.mxu2 }
 0x267   :  { %v953_v63 = vmax.f32 %v849_v60, 0.0  ;;  %v1137_v0 = vadd.f32 %v1918_v34, %v1136_v61 }
 0x269   :  { %v998_v26 = vpack.c.bf16 %v953_v63, %v952_v62  ;;  %1268 = vst [vmem:[#allocation10 + $0x98] sm:$0xff] %v1137_v0 }
 0x26b   :  { %1178 = vmatmul.bf16.gmra.mxu2 %v998_v26 }
 0x26c   :  { %v851_v2 = vpop.f32.mrf.mxu1 }
 0x26d   :  { %v852_v10 = vadd.f32 %v1866_v49, %v851_v2 }
 0x26e   :  { %v1139_v6 = vpop.f32.mrf.mxu2 }
 0x26f   :  { %v1140_v7 = vadd.f32 %v1918_v34, %v1139_v6  ;;  %v954_v15 = vmax.f32 %v852_v10, 0.0 }
 0x270   :  { %v1209_v45 = vpop.f32.mrf.mxu3 }
 0x271   :  { %1269 = vst [vmem:[#allocation10 + $0xa0] sm:$0xff] %v1140_v7  ;;  %v1210_v51 = vadd.f32 %v1918_v34, %v1209_v45 }
 0x273   :  { %1297 = vst [vmem:[#allocation10 + $0x180] sm:$0xff] %v1210_v51 }
 0x274   :  { %v853_v11 = vpop.f32.mrf.mxu1 }
 0x275   :  { %v854_v13 = vadd.f32 %v1866_v49, %v853_v11 }
 0x276   :  { %v1141_v14 = vpop.f32.mrf.mxu2 }
 0x277   :  { %v955_v16 = vmax.f32 %v854_v13, 0.0  ;;  %v1142_v17 = vadd.f32 %v1918_v34, %v1141_v14 }
 0x278   :  { %v1211_v54 = vpop.f32.mrf.mxu3 }
 0x279   :  { %v999_v18 = vpack.c.bf16 %v955_v16, %v954_v15  ;;  %1270 = vst [vmem:[#allocation10 + $0xa8] sm:$0xff] %v1142_v17  ;;  %v1212_v56 = vadd.f32 %v1918_v34, %v1211_v54 }
 0x27b   :  { %1183 = vmatmul.bf16.gmra.mxu2 %v999_v18  ;;  %1298 = vst [vmem:[#allocation10 + $0x188] sm:$0xff] %v1212_v56 }
 0x27c   :  { %v856_v20 = vpop.f32.mrf.mxu1 }
 0x27d   :  { %v857_v29 = vadd.f32 %v1866_v49, %v856_v20 }
 0x27e   :  { %v1144_v24 = vpop.f32.mrf.mxu2 }
 0x27f   :  { %v1145_v25 = vadd.f32 %v1918_v34, %v1144_v24  ;;  %v956_v33 = vmax.f32 %v857_v29, 0.0 }
 0x280   :  { %v1214_v61 = vpop.f32.mrf.mxu3 }
 0x281   :  { %1271 = vst [vmem:[#allocation10 + $0xb0] sm:$0xff] %v1145_v25  ;;  %v1215_v1 = vadd.f32 %v1918_v34, %v1214_v61 }
 0x283   :  { %1299 = vst [vmem:[#allocation10 + $0x190] sm:$0xff] %v1215_v1 }
 0x284   :  { %v858_v30 = vpop.f32.mrf.mxu1 }
 0x285   :  { %v859_v31 = vadd.f32 %v1866_v49, %v858_v30 }
 0x286   :  { %v1146_v32 = vpop.f32.mrf.mxu2 }
 0x287   :  { %v957_v35 = vmax.f32 %v859_v31, 0.0  ;;  %v1147_v36 = vadd.f32 %v1918_v34, %v1146_v32 }
 0x288   :  { %v1216_v4 = vpop.f32.mrf.mxu3 }
 0x289   :  { %v1000_v37 = vpack.c.bf16 %v957_v35, %v956_v33  ;;  %1272 = vst [vmem:[#allocation10 + $0xb8] sm:$0xff] %v1147_v36  ;;  %v1217_v6 = vadd.f32 %v1918_v34, %v1216_v4 }
 0x28b   :  { %1188 = vmatmul.bf16.gmra.mxu2 %v1000_v37  ;;  %1300 = vst [vmem:[#allocation10 + $0x198] sm:$0xff] %v1217_v6 }
 0x28c   :  { %v861_v38 = vpop.f32.mrf.mxu1 }
 0x28d   :  { %v862_v42 = vadd.f32 %v1650_v41, %v861_v38 }
 0x28e   :  { %v1149_v39 = vpop.f32.mrf.mxu2 }
 0x28f   :  { %v1150_v40 = vadd.f32 %v1918_v34, %v1149_v39  ;;  %v958_v46 = vmax.f32 %v862_v42, 0.0 }
 0x291   :  { %1273 = vst [vmem:[#allocation10 + $0xc0] sm:$0xff] %v1150_v40 }
 0x293   :  { %v1219_v11 = vpop.f32.mrf.mxu3 }
 0x294   :  { %v863_v43 = vpop.f32.mrf.mxu1  ;;  %v1220_v16 = vadd.f32 %v1918_v34, %v1219_v11 }
 0x295   :  { %v864_v49 = vadd.f32 %v1650_v41, %v863_v43 }
 0x296   :  { %v1151_v44 = vpop.f32.mrf.mxu2  ;;  %1301 = vst [vmem:[#allocation10 + $0x1a0] sm:$0xff] %v1220_v16 }
 0x297   :  { %v959_v47 = vmax.f32 %v864_v49, 0.0  ;;  %v1152_v48 = vadd.f32 %v1918_v34, %v1151_v44 }
 0x299   :  { %v1001_v50 = vpack.c.bf16 %v959_v47, %v958_v46  ;;  %1274 = vst [vmem:[#allocation10 + $0xc8] sm:$0xff] %v1152_v48 }
 0x29b   :  { %1193 = vmatmul.bf16.gmra.mxu2 %v1001_v50  ;;  %v1221_v18 = vpop.f32.mrf.mxu3 }
 0x29c   :  { %v866_v52 = vpop.f32.mrf.mxu1  ;;  %v1222_v20 = vadd.f32 %v1918_v34, %v1221_v18 }
 0x29d   :  { %v867_v57 = vadd.f32 %v1650_v41, %v866_v52 }
 0x29e   :  { %v1154_v53 = vpop.f32.mrf.mxu2  ;;  %1302 = vst [vmem:[#allocation10 + $0x1a8] sm:$0xff] %v1222_v20 }
 0x29f   :  { %v1155_v55 = vadd.f32 %v1918_v34, %v1154_v53  ;;  %v960_v62 = vmax.f32 %v867_v57, 0.0 }
 0x2a1   :  { %1275 = vst [vmem:[#allocation10 + $0xd0] sm:$0xff] %v1155_v55 }
 0x2a3   :  { %v1224_v22 = vpop.f32.mrf.mxu3 }
 0x2a4   :  { %v868_v58 = vpop.f32.mrf.mxu1  ;;  %v1225_v24 = vadd.f32 %v1918_v34, %v1224_v22 }
 0x2a5   :  { %v869_v59 = vadd.f32 %v1650_v41, %v868_v58 }
 0x2a6   :  { %v1156_v60 = vpop.f32.mrf.mxu2  ;;  %1303 = vst [vmem:[#allocation10 + $0x1b0] sm:$0xff] %v1225_v24 }
 0x2a7   :  { %v961_v63 = vmax.f32 %v869_v59, 0.0  ;;  %v1157_v0 = vadd.f32 %v1918_v34, %v1156_v60 }
 0x2a9   :  { %v1002_v26 = vpack.c.bf16 %v961_v63, %v960_v62  ;;  %1276 = vst [vmem:[#allocation10 + $0xd8] sm:$0xff] %v1157_v0 }
 0x2ab   :  { %1198 = vmatmul.bf16.gmra.mxu2 %v1002_v26  ;;  %v1226_v27 = vpop.f32.mrf.mxu3 }
 0x2ac   :  { %v871_v2 = vpop.f32.mrf.mxu1  ;;  %v1227_v29 = vadd.f32 %v1918_v34, %v1226_v27 }
 0x2ad   :  { %v872_v7 = vadd.f32 %v1650_v41, %v871_v2 }
 0x2ae   :  { %v1159_v3 = vpop.f32.mrf.mxu2  ;;  %1304 = vst [vmem:[#allocation10 + $0x1b8] sm:$0xff] %v1227_v29 }
 0x2af   :  { %v1160_v5 = vadd.f32 %v1918_v34, %v1159_v3  ;;  %v962_v12 = vmax.f32 %v872_v7, 0.0 }
 0x2b1   :  { %1277 = vst [vmem:[#allocation10 + $0xe0] sm:$0xff] %v1160_v5 }
 0x2b3   :  { %v1229_v31 = vpop.f32.mrf.mxu3 }
 0x2b4   :  { %v873_v8 = vpop.f32.mrf.mxu1  ;;  %v1230_v33 = vadd.f32 %v1918_v34, %v1229_v31 }
 0x2b5   :  { %v874_v9 = vadd.f32 %v1650_v41, %v873_v8 }
 0x2b6   :  { %v1161_v10 = vpop.f32.mrf.mxu2  ;;  %1305 = vst [vmem:[#allocation10 + $0x1c0] sm:$0xff] %v1230_v33 }
 0x2b7   :  { %v963_v13 = vmax.f32 %v874_v9, 0.0  ;;  %v1162_v14 = vadd.f32 %v1918_v34, %v1161_v10 }
 0x2b9   :  { %v1003_v15 = vpack.c.bf16 %v963_v13, %v962_v12  ;;  %1278 = vst [vmem:[#allocation10 + $0xe8] sm:$0xff] %v1162_v14 }
 0x2bb   :  { %1203 = vmatmul.bf16.gmra.mxu2 %v1003_v15  ;;  %v1231_v36 = vpop.f32.mrf.mxu3 }
 0x2bc   :  { %v1232_v38 = vadd.f32 %v1918_v34, %v1231_v36 }
 0x2be   :  { %v1164_v17 = vpop.f32.mrf.mxu2  ;;  %1306 = vst [vmem:[#allocation10 + $0x1c8] sm:$0xff] %v1232_v38 }
 0x2bf   :  { %v1165_v19 = vadd.f32 %v1918_v34, %v1164_v17 }
 0x2c1   :  { %1279 = vst [vmem:[#allocation10 + $0xf0] sm:$0xff] %v1165_v19 }
 0x2c3   :  { %v1234_v40 = vpop.f32.mrf.mxu3 }
 0x2c4   :  { %v1235_v42 = vadd.f32 %v1918_v34, %v1234_v40 }
 0x2c6   :  { %v1166_v21 = vpop.f32.mrf.mxu2  ;;  %1307 = vst [vmem:[#allocation10 + $0x1d0] sm:$0xff] %v1235_v42 }
 0x2c7   :  { %v1167_v23 = vadd.f32 %v1918_v34, %v1166_v21 }
 0x2c9   :  { %1280 = vst [vmem:[#allocation10 + $0xf8] sm:$0xff] %v1167_v23 }
 0x2cb   :  { %v1236_v49 = vpop.f32.mrf.mxu3 }
 0x2cc   :  { %v1237_v45 = vadd.f32 %v1918_v34, %v1236_v49 }
 0x2ce   :  { %v1169_v25 = vpop.f32.mrf.mxu2  ;;  %1308 = vst [vmem:[#allocation10 + $0x1d8] sm:$0xff] %v1237_v45 }
 0x2cf   :  { %v1170_v28 = vadd.f32 %v1918_v34, %v1169_v25 }
 0x2d1   :  { %1281 = vst [vmem:[#allocation10 + $0x100] sm:$0xff] %v1170_v28 }
 0x2d3   :  { %v1239_v47 = vpop.f32.mrf.mxu3 }
 0x2d4   :  { %v1240_v50 = vadd.f32 %v1918_v34, %v1239_v47 }
 0x2d6   :  { %v1171_v30 = vpop.f32.mrf.mxu2  ;;  %1309 = vst [vmem:[#allocation10 + $0x1e0] sm:$0xff] %v1240_v50 }
 0x2d7   :  { %v1172_v32 = vadd.f32 %v1918_v34, %v1171_v30 }
 0x2d9   :  { %1282 = vst [vmem:[#allocation10 + $0x108] sm:$0xff] %v1172_v32 }
 0x2db   :  { %v1241_v52 = vpop.f32.mrf.mxu3 }
 0x2dc   :  { %v1242_v54 = vadd.f32 %v1918_v34, %v1241_v52 }
 0x2de   :  { %v1174_v35 = vpop.f32.mrf.mxu2  ;;  %1310 = vst [vmem:[#allocation10 + $0x1e8] sm:$0xff] %v1242_v54 }
 0x2df   :  { %v1175_v37 = vadd.f32 %v1918_v34, %v1174_v35 }
 0x2e1   :  { %1283 = vst [vmem:[#allocation10 + $0x110] sm:$0xff] %v1175_v37 }
 0x2e4   :  { %v1244_v56 = vpop.f32.mrf.mxu3 }
 0x2e5   :  { %v1245_v58 = vadd.f32 %v1918_v34, %v1244_v56 }
 0x2e6   :  { %v1176_v39 = vpop.f32.mrf.mxu2 }
 0x2e7   :  { %v1177_v41 = vadd.f32 %v1918_v34, %v1176_v39  ;;  %1311 = vst [vmem:[#allocation10 + $0x1f0] sm:$0xff] %v1245_v58 }
 0x2e9   :  { %1284 = vst [vmem:[#allocation10 + $0x118] sm:$0xff] %v1177_v41 }
 0x2ec   :  { %v1246_v60 = vpop.f32.mrf.mxu3 }
 0x2ed   :  { %v1247_v62 = vadd.f32 %v1918_v34, %v1246_v60 }
 0x2ee   :  { %v1179_v43 = vpop.f32.mrf.mxu2 }
 0x2ef   :  { %v1180_v44 = vadd.f32 %v1918_v34, %v1179_v43  ;;  %1312 = vst [vmem:[#allocation10 + $0x1f8] sm:$0xff] %v1247_v62 }
 0x2f1   :  { %1285 = vst [vmem:[#allocation10 + $0x120] sm:$0xff] %v1180_v44 }
 0x2f6   :  { %v1181_v46 = vpop.f32.mrf.mxu2 }
 0x2f7   :  { %v1182_v48 = vadd.f32 %v1918_v34, %v1181_v46 }
 0x2f9   :  { %1286 = vst [vmem:[#allocation10 + $0x128] sm:$0xff] %v1182_v48 }
 0x2fe   :  { %v1184_v51 = vpop.f32.mrf.mxu2 }
 0x2ff   :  { %v1185_v53 = vadd.f32 %v1918_v34, %v1184_v51 }
 0x301   :  { %1287 = vst [vmem:[#allocation10 + $0x130] sm:$0xff] %v1185_v53 }
 0x306   :  { %v1186_v55 = vpop.f32.mrf.mxu2 }
 0x307   :  { %v1187_v57 = vadd.f32 %v1918_v34, %v1186_v55 }
 0x309   :  { %1288 = vst [vmem:[#allocation10 + $0x138] sm:$0xff] %v1187_v57 }
 0x30e   :  { %v1189_v59 = vpop.f32.mrf.mxu2 }
 0x30f   :  { %v1190_v61 = vadd.f32 %v1918_v34, %v1189_v59 }
 0x311   :  { %1289 = vst [vmem:[#allocation10 + $0x140] sm:$0xff] %v1190_v61 }
 0x316   :  { %v1191_v63 = vpop.f32.mrf.mxu2 }
 0x317   :  { %v1192_v0 = vadd.f32 %v1918_v34, %v1191_v63 }
 0x319   :  { %1290 = vst [vmem:[#allocation10 + $0x148] sm:$0xff] %v1192_v0 }
 0x31e   :  { %v1194_v26 = vpop.f32.mrf.mxu2 }
 0x31f   :  { %v1195_v1 = vadd.f32 %v1918_v34, %v1194_v26 }
 0x321   :  { %1291 = vst [vmem:[#allocation10 + $0x150] sm:$0xff] %v1195_v1 }
 0x326   :  { %v1196_v2 = vpop.f32.mrf.mxu2 }
 0x327   :  { %v1197_v3 = vadd.f32 %v1918_v34, %v1196_v2 }
 0x329   :  { %1292 = vst [vmem:[#allocation10 + $0x158] sm:$0xff] %v1197_v3 }
 0x32e   :  { %v1199_v4 = vpop.f32.mrf.mxu2 }
 0x32f   :  { %v1200_v5 = vadd.f32 %v1918_v34, %v1199_v4 }
 0x331   :  { %1293 = vst [vmem:[#allocation10 + $0x160] sm:$0xff] %v1200_v5 }
 0x336   :  { %v1201_v6 = vpop.f32.mrf.mxu2 }
 0x337   :  { %v1202_v7 = vadd.f32 %v1918_v34, %v1201_v6 }
 0x339   :  { %1294 = vst [vmem:[#allocation10 + $0x168] sm:$0xff] %v1202_v7 }
 0x33e   :  { %v1204_v8 = vpop.f32.mrf.mxu2 }
 0x33f   :  { %v1205_v9 = vadd.f32 %v1918_v34, %v1204_v8 }
 0x341   :  { %1295 = vst [vmem:[#allocation10 + $0x170] sm:$0xff] %v1205_v9 }
 0x346   :  { %v1206_v10 = vpop.f32.mrf.mxu2 }
 0x347   :  { %v1207_v11 = vadd.f32 %v1918_v34, %v1206_v10 }
 0x349   :  { %1296 = vst [vmem:[#allocation10 + $0x178] sm:$0xff] %v1207_v11 }
 0x34a   :  { %1325 = dma.vmem_to_hbm [thread:$0]  %s1318_s25, 8192, %s1320_s28, [#allocation4], %s1786_s29, %s1786_s29, %s1787_s30  }
 0x34b   :  { %1777 = dma.done.wait [#allocation4], 8192  }
 0x34c   :  { %1778 = vsyncadd [#allocation4], 4294959104 }
 0x34d   :  { %1330 = vsyncpa [#allocation3], 1 }
 0x34e   :  { %1331 = vsyncpa [#allocation6], 1 }
 0x34f   :  { %1332 = vsyncpa [#allocation9], 1 }
 0x350   :  { %1333 = vsyncpa [#allocation4], 1 }

</bundles_post_ra>
